<compile_context>
chip_gen: v6e
topology: v6e:2x2x1
jax: 0.10.0
libtpu: 0.0.40
codegen_flags: <defaults>
</compile_context>

<pallas_src>
import numpy as np
import jax
import jax.numpy as jnp
from jax.experimental import pallas as pl
from jax.experimental.pallas import tpu as pltpu

_EPS = 1e-5
_LANE = 128
_CFG = ((1, 0), (2, 2), (2, 2), (2, 3), (2, 5))  # (stride, padding), K=4 each


def _round_up(x, m=_LANE):
    return ((x + m - 1) // m) * m


# ----------------------------------------------------------------------------
# Host-side (numpy) constant construction: scatter + pooling matrices.
# ----------------------------------------------------------------------------
def _convt_scatter_matrix_np(w, l_in, stride, padding):
    """Dense M (C_in*L_in, C_out*L_out) such that y_flat = x_flat @ M equals
    PyTorch ConvTranspose1d (bias=False).  x_flat index = ci*L_in + li,
    y_flat index = co*L_out + lo.  w has shape (C_in, C_out, K)."""
    w = np.asarray(w, dtype=np.float32)
    c_in, c_out, k = w.shape
    l_out = (l_in - 1) * stride - 2 * padding + k
    m = np.zeros((c_in, l_in, c_out, l_out), dtype=np.float32)
    for li in range(l_in):
        for kk in range(k):
            lo = li * stride - padding + kk
            if 0 <= lo < l_out:
                m[:, li, :, lo] += w[:, :, kk]
    return m.reshape(c_in * l_in, c_out * l_out), l_out


def _pool_matrix_np(c_out, l_out):
    """P (C*L, C): row co*L+lo -> column co. Sums positions per channel."""
    return np.repeat(np.eye(c_out, dtype=np.float32), l_out, axis=0)


# ----------------------------------------------------------------------------
# Parameters + constants.
# ----------------------------------------------------------------------------
def init_generator_params(key, latent_vector_size, features, sequence_len):
    nz, nc, ngf = latent_vector_size, features, sequence_len
    shapes = [  # PyTorch ConvTranspose1d weight shape: (C_in, C_out, K)
        (nz, ngf * 8, 4),
        (ngf * 8, ngf * 4, 4),
        (ngf * 4, ngf * 2, 4),
        (ngf * 2, ngf, 4),
        (ngf, nc, 4),
    ]
    params = {}
    for i, shp in enumerate(shapes):
        key, sub = jax.random.split(key)
        fan = shp[0] * shp[2]
        params[f"w{i}"] = jax.random.normal(sub, shp, jnp.float32) / np.sqrt(fan)
        if i < 4:  # BatchNorm affine params (PyTorch default: gamma=1, beta=0)
            c_out = shp[1]
            params[f"gamma{i}"] = jnp.ones((c_out,), jnp.float32)
            params[f"beta{i}"] = jnp.zeros((c_out,), jnp.float32)
    return params


def build_generator_constants(params, l_in=1):
    """Precompute (once, in numpy) all kernel constants, with every flattened
    output dim padded up to a multiple of 128 lanes (zero cols on M, zero
    rows/cols on the pooling matrices, zero rows on the next M so padded
    lanes never contribute).

    Returns (const_arrays, meta): a flat tuple of device arrays ordered
    [M0,P0,Pt0,g0,b0, M1,..., M4] and a static tuple of (c_out, l_out, d_pad).
    """
    arrays = []
    meta = []
    l = l_in
    d_in_pad = None  # padded width of this layer's input (None -> layer 0)
    for i in range(5):
        w = np.asarray(params[f"w{i}"], dtype=np.float32)
        stride, pad = _CFG[i]
        m, l_out = _convt_scatter_matrix_np(w, l, stride, pad)
        c_out = w.shape[1]
        d_real = c_out * l_out
        d_pad = _round_up(d_real)
        if i > 0 and d_in_pad > m.shape[0]:
            # Zero rows for the previous layer's padded lanes: any value in
            # those lanes (they are zero by construction) cannot propagate.
            m = np.pad(m, ((0, d_in_pad - m.shape[0]), (0, 0)))
        if d_pad > d_real:
            m = np.pad(m, ((0, 0), (0, d_pad - d_real)))  # lane-dense output
        arrays.append(jnp.asarray(m, dtype=jnp.bfloat16))  # MXU operand: bf16
        if i < 4:
            p = _pool_matrix_np(c_out, l_out)               # (d_real, C)
            if d_pad > d_real:
                p = np.pad(p, ((0, d_pad - d_real), (0, 0)))  # zero rows
            # 0/1 entries are exact in bf16 -> half the DMA/VMEM footprint.
            arrays.append(jnp.asarray(p, dtype=jnp.bfloat16))        # (D, C)
            arrays.append(jnp.asarray(p.T, dtype=jnp.bfloat16))      # (C, D)
            arrays.append(jnp.asarray(params[f"gamma{i}"],
                                      dtype=jnp.float32).reshape(1, c_out))
            arrays.append(jnp.asarray(params[f"beta{i}"],
                                      dtype=jnp.float32).reshape(1, c_out))
        meta.append((c_out, l_out, d_pad))
        l = l_out
        d_in_pad = d_pad
    return tuple(arrays), tuple(meta)


# ----------------------------------------------------------------------------
# Fused Pallas kernel: all 5 layers, intermediates stay in VMEM registers.
# ----------------------------------------------------------------------------
def _make_fused_kernel(meta, n_batch, eps=_EPS):
    n_layers = len(meta)
    # BN counts use the REAL (unpadded) number of positions; padded lanes
    # contribute nothing because P's padded rows are zero.
    inv_counts = tuple(1.0 / float(n_batch * l_out) for (_, l_out, _) in meta[:-1])

    def kernel(*refs):
        x_ref, o_ref = refs[0], refs[-1]
        layer_refs = refs[1:-1]

        # Row selector [[0],[1]] used to stack pairs of (1, D) rows into (2, D)
        # without an in-kernel concatenate.
        row = jax.lax.broadcasted_iota(jnp.int32, (2, 1), 0)
        is_row1 = row == 1

        h = x_ref[...]  # bf16, (N, C0*L0)
        idx = 0
        for i in range(n_layers - 1):
            m_ref, p_ref, pt_ref, g_ref, b_ref = layer_refs[idx:idx + 5]
            idx += 5
            # ConvTranspose1d as one MXU matmul (bf16 operands, f32 accumulate).
            y = jnp.dot(h, m_ref[...], preferred_element_type=jnp.float32)  # (N, D)

            # BatchNorm1d (training-mode batch statistics) in f32.
            s1 = jnp.sum(y, axis=0, keepdims=True)          # (1, D) sum over N
            s2 = jnp.sum(y * y, axis=0, keepdims=True)      # (1, D)
            stacked = jnp.where(is_row1, s2, s1)            # (2, D)
            stats = jnp.dot(stacked, p_ref[...].astype(jnp.float32),
                            preferred_element_type=jnp.float32)  # (2, C)
            mean = stats[0:1, :] * inv_counts[i]
            # Clamp: E[y^2]-mean^2 can go slightly negative from f32 cancellation.
            var = jnp.maximum(stats[1:2, :] * inv_counts[i] - mean * mean, 0.0)
            scale = g_ref[...] * jax.lax.rsqrt(var + eps)        # (1, C)
            shift = b_ref[...] - mean * scale                    # (1, C)
            ss = jnp.where(is_row1, shift, scale)                # (2, C)
            ss_f = jnp.dot(ss, pt_ref[...].astype(jnp.float32),
                           preferred_element_type=jnp.float32)   # (2, D)

            # Affine + ReLU in f32, then bf16 for the next MXU matmul.
            # Padded lanes: y=0, scale=shift=0 (Pt zero cols) -> stay exactly 0.
            h = jnp.maximum(y * ss_f[0:1, :] + ss_f[1:2, :], 0.0)
            h = h.astype(jnp.bfloat16)

        # Final ConvTranspose1d + Tanh (no BN / ReLU; bias=False in the module).
        y = jnp.dot(h, layer_refs[idx][...], preferred_element_type=jnp.float32)
        o_ref[...] = jnp.tanh(y)   # lane-dense (padded) store; wrapper slices

    return kernel


def make_generator_forward(meta):
    c_last, l_last, d_last_pad = meta[-1]
    d_last_real = c_last * l_last
    vmem = pl.BlockSpec(memory_space=pltpu.MemorySpace.VMEM)

    def forward(const_arrays, x):
        n, c0, l0 = x.shape
        x_flat = x.reshape(n, c0 * l0).astype(jnp.bfloat16)
        kernel = _make_fused_kernel(meta, n)

        # Explicit VMEM budget (v7x has 64 MiB physical / 32 MiB default scope).
        const_bytes = sum(int(np.prod(a.shape)) * jnp.dtype(a.dtype).itemsize
                          for a in const_arrays)
        max_d = max(d_pad for (_, _, d_pad) in meta)
        act_bytes = 6 * n * max_d * 4          # y, y*y, h + headroom, f32
        vmem_limit = int(min(48 << 20,
                             max(16 << 20, 2 * (const_bytes + act_bytes))))

        y_flat = pl.pallas_call(
            kernel,
            out_shape=jax.ShapeDtypeStruct((n, d_last_pad), jnp.float32),
            in_specs=[vmem] * (1 + len(const_arrays)),
            out_specs=vmem,
            compiler_params=pltpu.CompilerParams(vmem_limit_bytes=vmem_limit),
        )(x_flat, *const_arrays)
        # Slice the lane-padding back off and restore (N, C, L).
        return y_flat[:, :d_last_real].reshape(n, c_last, l_last)

    return jax.jit(forward)


# ----------------------------------------------------------------------------
# Pure numpy f32 reference (same ConvTranspose / train-mode BN semantics).
# ----------------------------------------------------------------------------
def _reference_forward_f32(params, x_np):
    n = x_np.shape[0]
    l = x_np.shape[2]
    h = np.asarray(x_np, dtype=np.float32).reshape(n, -1)
    out = None
    for i in range(5):
        w = np.asarray(params[f"w{i}"], dtype=np.float32)
        stride, pad = _CFG[i]
        m, l_out = _convt_scatter_matrix_np(w, l, stride, pad)
        c_out = w.shape[1]
        y = (h @ m).reshape(n, c_out, l_out)
        if i < 4:
            mean = y.mean(axis=(0, 2), keepdims=True)
            var = y.var(axis=(0, 2), keepdims=True)          # biased
            g = np.asarray(params[f"gamma{i}"]).reshape(1, c_out, 1)
            b = np.asarray(params[f"beta{i}"]).reshape(1, c_out, 1)
            y = (y - mean) / np.sqrt(var + _EPS) * g + b
            h = np.maximum(y, 0.0).reshape(n, c_out * l_out)
        else:
            out = np.tanh(y)
        l = l_out
    return out


if __name__ == "__main__":
    # Small shapes: latent_vector_size=8, features=4, sequence_len=8, batch=2.
    nz, nc, ngf = 8, 4, 8
    n = 2
    key = jax.random.PRNGKey(0)
    k_param, k_x = jax.random.split(key)
    params = init_generator_params(k_param, nz, nc, ngf)
    const_arrays, meta = build_generator_constants(params, l_in=1)
    forward = make_generator_forward(meta)

    # DCGAN-style latent input: (N, nz, 1) in NCL layout.
    x = jax.random.normal(k_x, (n, nz, 1), jnp.float32)

    y = forward(const_arrays, x)
    jax.block_until_ready(y)

    # Length progression: 1 -> 4 -> 6 -> 10 -> 16 -> 24
    assert y.shape == (n, nc, 24), y.shape
    assert bool(jnp.all(jnp.isfinite(y)))

    # Sanity-check against an f32 numpy reference. Loose tolerance because the
    # kernel's matmul operands are bf16 (f32 accumulation / BN statistics).
    y_ref = _reference_forward_f32(params, np.asarray(x))
    np.testing.assert_allclose(np.asarray(y), y_ref, rtol=0.1, atol=0.1)

    print("KERNEL_OK")
</pallas_src>

<mosaic_0001>
module attributes {stable_mosaic.version = 11 : i64} {
  func.func @kernel(%arg0: memref<2x8xbf16, #tpu.memory_space<vmem>>, %arg1: memref<8x256xbf16, #tpu.memory_space<vmem>>, %arg2: memref<256x64xbf16, #tpu.memory_space<vmem>>, %arg3: memref<64x256xbf16, #tpu.memory_space<vmem>>, %arg4: memref<1x64xf32, #tpu.memory_space<vmem>>, %arg5: memref<1x64xf32, #tpu.memory_space<vmem>>, %arg6: memref<256x256xbf16, #tpu.memory_space<vmem>>, %arg7: memref<256x32xbf16, #tpu.memory_space<vmem>>, %arg8: memref<32x256xbf16, #tpu.memory_space<vmem>>, %arg9: memref<1x32xf32, #tpu.memory_space<vmem>>, %arg10: memref<1x32xf32, #tpu.memory_space<vmem>>, %arg11: memref<256x256xbf16, #tpu.memory_space<vmem>>, %arg12: memref<256x16xbf16, #tpu.memory_space<vmem>>, %arg13: memref<16x256xbf16, #tpu.memory_space<vmem>>, %arg14: memref<1x16xf32, #tpu.memory_space<vmem>>, %arg15: memref<1x16xf32, #tpu.memory_space<vmem>>, %arg16: memref<256x128xbf16, #tpu.memory_space<vmem>>, %arg17: memref<128x8xbf16, #tpu.memory_space<vmem>>, %arg18: memref<8x128xbf16, #tpu.memory_space<vmem>>, %arg19: memref<1x8xf32, #tpu.memory_space<vmem>>, %arg20: memref<1x8xf32, #tpu.memory_space<vmem>>, %arg21: memref<128x128xbf16, #tpu.memory_space<vmem>>, %arg22: memref<2x128xf32, #tpu.memory_space<vmem>>) attributes {dimension_semantics = [], scalar_prefetch = 0 : i64, scratch_operands = 0 : i64, tpu.core_type = #tpu.core_type<tc>} {
    %0 = tpu.iota {dimensions = array<i32: 0>} : vector<2x1xi32>
    %c1_i32 = arith.constant 1 : i32
    %1 = vector.broadcast %c1_i32 : i32 to vector<2x1xi32>
    %2 = arith.cmpi eq, %0, %1 : vector<2x1xi32>
    %c0 = arith.constant 0 : index
    %c0_0 = arith.constant 0 : index
    %3 = vector.load %arg0[%c0, %c0_0] : memref<2x8xbf16, #tpu.memory_space<vmem>>, vector<2x8xbf16>
    %c0_1 = arith.constant 0 : index
    %c0_2 = arith.constant 0 : index
    %4 = vector.load %arg1[%c0_1, %c0_2] : memref<8x256xbf16, #tpu.memory_space<vmem>>, vector<8x256xbf16>
    %cst = arith.constant dense<0.000000e+00> : vector<2x256xf32>
    %5 = tpu.matmul %3, %4, %cst {dimension_numbers = #tpu.dot_dimension_numbers<[1], [0], [0], [1], [0, 0, 1, 1], [], []>} : vector<2x8xbf16>, vector<8x256xbf16>, vector<2x256xf32> -> vector<2x256xf32>
    %cst_3 = arith.constant dense<0.000000e+00> : vector<256xf32>
    %6 = vector.multi_reduction <add>, %5, %cst_3 [0] : vector<2x256xf32> to vector<256xf32>
    %7 = vector.shape_cast %6 : vector<256xf32> to vector<1x256xf32>
    %8 = arith.mulf %5, %5 : vector<2x256xf32>
    %cst_4 = arith.constant dense<0.000000e+00> : vector<256xf32>
    %9 = vector.multi_reduction <add>, %8, %cst_4 [0] : vector<2x256xf32> to vector<256xf32>
    %10 = vector.shape_cast %9 : vector<256xf32> to vector<1x256xf32>
    %11 = vector.shape_cast %2 : vector<2x1xi1> to vector<2x1xi1>
    %12 = vector.broadcast %11 : vector<2x1xi1> to vector<2x256xi1>
    %13 = vector.shape_cast %10 : vector<1x256xf32> to vector<1x256xf32>
    %14 = vector.broadcast %13 : vector<1x256xf32> to vector<2x256xf32>
    %15 = vector.shape_cast %7 : vector<1x256xf32> to vector<1x256xf32>
    %16 = vector.broadcast %15 : vector<1x256xf32> to vector<2x256xf32>
    %17 = arith.select %12, %14, %16 : vector<2x256xi1>, vector<2x256xf32>
    %c0_5 = arith.constant 0 : index
    %c0_6 = arith.constant 0 : index
    %18 = vector.load %arg2[%c0_5, %c0_6] : memref<256x64xbf16, #tpu.memory_space<vmem>>, vector<256x64xbf16>
    %19 = arith.extf %18 : vector<256x64xbf16> to vector<256x64xf32>
    %cst_7 = arith.constant dense<0.000000e+00> : vector<2x64xf32>
    %20 = tpu.matmul %17, %19, %cst_7 {dimension_numbers = #tpu.dot_dimension_numbers<[1], [0], [0], [1], [0, 0, 1, 1], [], []>} : vector<2x256xf32>, vector<256x64xf32>, vector<2x64xf32> -> vector<2x64xf32>
    %21 = vector.extract_strided_slice %20 {offsets = [0, 0], sizes = [1, 64], strides = [1, 1]} : vector<2x64xf32> to vector<1x64xf32>
    %cst_8 = arith.constant 1.250000e-01 : f32
    %22 = vector.broadcast %cst_8 : f32 to vector<1x64xf32>
    %23 = arith.mulf %21, %22 : vector<1x64xf32>
    %24 = vector.extract_strided_slice %20 {offsets = [1, 0], sizes = [1, 64], strides = [1, 1]} : vector<2x64xf32> to vector<1x64xf32>
    %cst_9 = arith.constant 1.250000e-01 : f32
    %25 = vector.broadcast %cst_9 : f32 to vector<1x64xf32>
    %26 = arith.mulf %24, %25 : vector<1x64xf32>
    %27 = arith.mulf %23, %23 : vector<1x64xf32>
    %28 = arith.subf %26, %27 : vector<1x64xf32>
    %cst_10 = arith.constant 0.000000e+00 : f32
    %29 = vector.broadcast %cst_10 : f32 to vector<1x64xf32>
    %30 = arith.maximumf %28, %29 : vector<1x64xf32>
    %c0_11 = arith.constant 0 : index
    %c0_12 = arith.constant 0 : index
    %31 = vector.load %arg4[%c0_11, %c0_12] : memref<1x64xf32, #tpu.memory_space<vmem>>, vector<1x64xf32>
    %cst_13 = arith.constant 9.99999974E-6 : f32
    %32 = vector.broadcast %cst_13 : f32 to vector<1x64xf32>
    %33 = arith.addf %30, %32 : vector<1x64xf32>
    %34 = math.rsqrt %33 : vector<1x64xf32>
    %35 = arith.mulf %31, %34 : vector<1x64xf32>
    %c0_14 = arith.constant 0 : index
    %c0_15 = arith.constant 0 : index
    %36 = vector.load %arg5[%c0_14, %c0_15] : memref<1x64xf32, #tpu.memory_space<vmem>>, vector<1x64xf32>
    %37 = arith.mulf %23, %35 : vector<1x64xf32>
    %38 = arith.subf %36, %37 : vector<1x64xf32>
    %39 = vector.shape_cast %2 : vector<2x1xi1> to vector<2x1xi1>
    %40 = vector.broadcast %39 : vector<2x1xi1> to vector<2x64xi1>
    %41 = vector.shape_cast %38 : vector<1x64xf32> to vector<1x64xf32>
    %42 = vector.broadcast %41 : vector<1x64xf32> to vector<2x64xf32>
    %43 = vector.shape_cast %35 : vector<1x64xf32> to vector<1x64xf32>
    %44 = vector.broadcast %43 : vector<1x64xf32> to vector<2x64xf32>
    %45 = arith.select %40, %42, %44 : vector<2x64xi1>, vector<2x64xf32>
    %c0_16 = arith.constant 0 : index
    %c0_17 = arith.constant 0 : index
    %46 = vector.load %arg3[%c0_16, %c0_17] : memref<64x256xbf16, #tpu.memory_space<vmem>>, vector<64x256xbf16>
    %47 = arith.extf %46 : vector<64x256xbf16> to vector<64x256xf32>
    %cst_18 = arith.constant dense<0.000000e+00> : vector<2x256xf32>
    %48 = tpu.matmul %45, %47, %cst_18 {dimension_numbers = #tpu.dot_dimension_numbers<[1], [0], [0], [1], [0, 0, 1, 1], [], []>} : vector<2x64xf32>, vector<64x256xf32>, vector<2x256xf32> -> vector<2x256xf32>
    %49 = vector.extract_strided_slice %48 {offsets = [0, 0], sizes = [1, 256], strides = [1, 1]} : vector<2x256xf32> to vector<1x256xf32>
    %50 = vector.broadcast %49 : vector<1x256xf32> to vector<2x256xf32>
    %51 = arith.mulf %5, %50 : vector<2x256xf32>
    %52 = vector.extract_strided_slice %48 {offsets = [1, 0], sizes = [1, 256], strides = [1, 1]} : vector<2x256xf32> to vector<1x256xf32>
    %53 = vector.broadcast %52 : vector<1x256xf32> to vector<2x256xf32>
    %54 = arith.addf %51, %53 : vector<2x256xf32>
    %cst_19 = arith.constant 0.000000e+00 : f32
    %55 = vector.broadcast %cst_19 : f32 to vector<2x256xf32>
    %56 = arith.maximumf %54, %55 : vector<2x256xf32>
    %57 = arith.truncf %56 : vector<2x256xf32> to vector<2x256xbf16>
    %c0_20 = arith.constant 0 : index
    %c0_21 = arith.constant 0 : index
    %58 = vector.load %arg6[%c0_20, %c0_21] : memref<256x256xbf16, #tpu.memory_space<vmem>>, vector<256x256xbf16>
    %cst_22 = arith.constant dense<0.000000e+00> : vector<2x256xf32>
    %59 = tpu.matmul %57, %58, %cst_22 {dimension_numbers = #tpu.dot_dimension_numbers<[1], [0], [0], [1], [0, 0, 1, 1], [], []>} : vector<2x256xbf16>, vector<256x256xbf16>, vector<2x256xf32> -> vector<2x256xf32>
    %cst_23 = arith.constant dense<0.000000e+00> : vector<256xf32>
    %60 = vector.multi_reduction <add>, %59, %cst_23 [0] : vector<2x256xf32> to vector<256xf32>
    %61 = vector.shape_cast %60 : vector<256xf32> to vector<1x256xf32>
    %62 = arith.mulf %59, %59 : vector<2x256xf32>
    %cst_24 = arith.constant dense<0.000000e+00> : vector<256xf32>
    %63 = vector.multi_reduction <add>, %62, %cst_24 [0] : vector<2x256xf32> to vector<256xf32>
    %64 = vector.shape_cast %63 : vector<256xf32> to vector<1x256xf32>
    %65 = vector.shape_cast %2 : vector<2x1xi1> to vector<2x1xi1>
    %66 = vector.broadcast %65 : vector<2x1xi1> to vector<2x256xi1>
    %67 = vector.shape_cast %64 : vector<1x256xf32> to vector<1x256xf32>
    %68 = vector.broadcast %67 : vector<1x256xf32> to vector<2x256xf32>
    %69 = vector.shape_cast %61 : vector<1x256xf32> to vector<1x256xf32>
    %70 = vector.broadcast %69 : vector<1x256xf32> to vector<2x256xf32>
    %71 = arith.select %66, %68, %70 : vector<2x256xi1>, vector<2x256xf32>
    %c0_25 = arith.constant 0 : index
    %c0_26 = arith.constant 0 : index
    %72 = vector.load %arg7[%c0_25, %c0_26] : memref<256x32xbf16, #tpu.memory_space<vmem>>, vector<256x32xbf16>
    %73 = arith.extf %72 : vector<256x32xbf16> to vector<256x32xf32>
    %cst_27 = arith.constant dense<0.000000e+00> : vector<2x32xf32>
    %74 = tpu.matmul %71, %73, %cst_27 {dimension_numbers = #tpu.dot_dimension_numbers<[1], [0], [0], [1], [0, 0, 1, 1], [], []>} : vector<2x256xf32>, vector<256x32xf32>, vector<2x32xf32> -> vector<2x32xf32>
    %75 = vector.extract_strided_slice %74 {offsets = [0, 0], sizes = [1, 32], strides = [1, 1]} : vector<2x32xf32> to vector<1x32xf32>
    %cst_28 = arith.constant 0.0833333358 : f32
    %76 = vector.broadcast %cst_28 : f32 to vector<1x32xf32>
    %77 = arith.mulf %75, %76 : vector<1x32xf32>
    %78 = vector.extract_strided_slice %74 {offsets = [1, 0], sizes = [1, 32], strides = [1, 1]} : vector<2x32xf32> to vector<1x32xf32>
    %cst_29 = arith.constant 0.0833333358 : f32
    %79 = vector.broadcast %cst_29 : f32 to vector<1x32xf32>
    %80 = arith.mulf %78, %79 : vector<1x32xf32>
    %81 = arith.mulf %77, %77 : vector<1x32xf32>
    %82 = arith.subf %80, %81 : vector<1x32xf32>
    %cst_30 = arith.constant 0.000000e+00 : f32
    %83 = vector.broadcast %cst_30 : f32 to vector<1x32xf32>
    %84 = arith.maximumf %82, %83 : vector<1x32xf32>
    %c0_31 = arith.constant 0 : index
    %c0_32 = arith.constant 0 : index
    %85 = vector.load %arg9[%c0_31, %c0_32] : memref<1x32xf32, #tpu.memory_space<vmem>>, vector<1x32xf32>
    %cst_33 = arith.constant 9.99999974E-6 : f32
    %86 = vector.broadcast %cst_33 : f32 to vector<1x32xf32>
    %87 = arith.addf %84, %86 : vector<1x32xf32>
    %88 = math.rsqrt %87 : vector<1x32xf32>
    %89 = arith.mulf %85, %88 : vector<1x32xf32>
    %c0_34 = arith.constant 0 : index
    %c0_35 = arith.constant 0 : index
    %90 = vector.load %arg10[%c0_34, %c0_35] : memref<1x32xf32, #tpu.memory_space<vmem>>, vector<1x32xf32>
    %91 = arith.mulf %77, %89 : vector<1x32xf32>
    %92 = arith.subf %90, %91 : vector<1x32xf32>
    %93 = vector.shape_cast %2 : vector<2x1xi1> to vector<2x1xi1>
    %94 = vector.broadcast %93 : vector<2x1xi1> to vector<2x32xi1>
    %95 = vector.shape_cast %92 : vector<1x32xf32> to vector<1x32xf32>
    %96 = vector.broadcast %95 : vector<1x32xf32> to vector<2x32xf32>
    %97 = vector.shape_cast %89 : vector<1x32xf32> to vector<1x32xf32>
    %98 = vector.broadcast %97 : vector<1x32xf32> to vector<2x32xf32>
    %99 = arith.select %94, %96, %98 : vector<2x32xi1>, vector<2x32xf32>
    %c0_36 = arith.constant 0 : index
    %c0_37 = arith.constant 0 : index
    %100 = vector.load %arg8[%c0_36, %c0_37] : memref<32x256xbf16, #tpu.memory_space<vmem>>, vector<32x256xbf16>
    %101 = arith.extf %100 : vector<32x256xbf16> to vector<32x256xf32>
    %cst_38 = arith.constant dense<0.000000e+00> : vector<2x256xf32>
    %102 = tpu.matmul %99, %101, %cst_38 {dimension_numbers = #tpu.dot_dimension_numbers<[1], [0], [0], [1], [0, 0, 1, 1], [], []>} : vector<2x32xf32>, vector<32x256xf32>, vector<2x256xf32> -> vector<2x256xf32>
    %103 = vector.extract_strided_slice %102 {offsets = [0, 0], sizes = [1, 256], strides = [1, 1]} : vector<2x256xf32> to vector<1x256xf32>
    %104 = vector.broadcast %103 : vector<1x256xf32> to vector<2x256xf32>
    %105 = arith.mulf %59, %104 : vector<2x256xf32>
    %106 = vector.extract_strided_slice %102 {offsets = [1, 0], sizes = [1, 256], strides = [1, 1]} : vector<2x256xf32> to vector<1x256xf32>
    %107 = vector.broadcast %106 : vector<1x256xf32> to vector<2x256xf32>
    %108 = arith.addf %105, %107 : vector<2x256xf32>
    %cst_39 = arith.constant 0.000000e+00 : f32
    %109 = vector.broadcast %cst_39 : f32 to vector<2x256xf32>
    %110 = arith.maximumf %108, %109 : vector<2x256xf32>
    %111 = arith.truncf %110 : vector<2x256xf32> to vector<2x256xbf16>
    %c0_40 = arith.constant 0 : index
    %c0_41 = arith.constant 0 : index
    %112 = vector.load %arg11[%c0_40, %c0_41] : memref<256x256xbf16, #tpu.memory_space<vmem>>, vector<256x256xbf16>
    %cst_42 = arith.constant dense<0.000000e+00> : vector<2x256xf32>
    %113 = tpu.matmul %111, %112, %cst_42 {dimension_numbers = #tpu.dot_dimension_numbers<[1], [0], [0], [1], [0, 0, 1, 1], [], []>} : vector<2x256xbf16>, vector<256x256xbf16>, vector<2x256xf32> -> vector<2x256xf32>
    %cst_43 = arith.constant dense<0.000000e+00> : vector<256xf32>
    %114 = vector.multi_reduction <add>, %113, %cst_43 [0] : vector<2x256xf32> to vector<256xf32>
    %115 = vector.shape_cast %114 : vector<256xf32> to vector<1x256xf32>
    %116 = arith.mulf %113, %113 : vector<2x256xf32>
    %cst_44 = arith.constant dense<0.000000e+00> : vector<256xf32>
    %117 = vector.multi_reduction <add>, %116, %cst_44 [0] : vector<2x256xf32> to vector<256xf32>
    %118 = vector.shape_cast %117 : vector<256xf32> to vector<1x256xf32>
    %119 = vector.shape_cast %2 : vector<2x1xi1> to vector<2x1xi1>
    %120 = vector.broadcast %119 : vector<2x1xi1> to vector<2x256xi1>
    %121 = vector.shape_cast %118 : vector<1x256xf32> to vector<1x256xf32>
    %122 = vector.broadcast %121 : vector<1x256xf32> to vector<2x256xf32>
    %123 = vector.shape_cast %115 : vector<1x256xf32> to vector<1x256xf32>
    %124 = vector.broadcast %123 : vector<1x256xf32> to vector<2x256xf32>
    %125 = arith.select %120, %122, %124 : vector<2x256xi1>, vector<2x256xf32>
    %c0_45 = arith.constant 0 : index
    %c0_46 = arith.constant 0 : index
    %126 = vector.load %arg12[%c0_45, %c0_46] : memref<256x16xbf16, #tpu.memory_space<vmem>>, vector<256x16xbf16>
    %127 = arith.extf %126 : vector<256x16xbf16> to vector<256x16xf32>
    %cst_47 = arith.constant dense<0.000000e+00> : vector<2x16xf32>
    %128 = tpu.matmul %125, %127, %cst_47 {dimension_numbers = #tpu.dot_dimension_numbers<[1], [0], [0], [1], [0, 0, 1, 1], [], []>} : vector<2x256xf32>, vector<256x16xf32>, vector<2x16xf32> -> vector<2x16xf32>
    %129 = vector.extract_strided_slice %128 {offsets = [0, 0], sizes = [1, 16], strides = [1, 1]} : vector<2x16xf32> to vector<1x16xf32>
    %cst_48 = arith.constant 5.000000e-02 : f32
    %130 = vector.broadcast %cst_48 : f32 to vector<1x16xf32>
    %131 = arith.mulf %129, %130 : vector<1x16xf32>
    %132 = vector.extract_strided_slice %128 {offsets = [1, 0], sizes = [1, 16], strides = [1, 1]} : vector<2x16xf32> to vector<1x16xf32>
    %cst_49 = arith.constant 5.000000e-02 : f32
    %133 = vector.broadcast %cst_49 : f32 to vector<1x16xf32>
    %134 = arith.mulf %132, %133 : vector<1x16xf32>
    %135 = arith.mulf %131, %131 : vector<1x16xf32>
    %136 = arith.subf %134, %135 : vector<1x16xf32>
    %cst_50 = arith.constant 0.000000e+00 : f32
    %137 = vector.broadcast %cst_50 : f32 to vector<1x16xf32>
    %138 = arith.maximumf %136, %137 : vector<1x16xf32>
    %c0_51 = arith.constant 0 : index
    %c0_52 = arith.constant 0 : index
    %139 = vector.load %arg14[%c0_51, %c0_52] : memref<1x16xf32, #tpu.memory_space<vmem>>, vector<1x16xf32>
    %cst_53 = arith.constant 9.99999974E-6 : f32
    %140 = vector.broadcast %cst_53 : f32 to vector<1x16xf32>
    %141 = arith.addf %138, %140 : vector<1x16xf32>
    %142 = math.rsqrt %141 : vector<1x16xf32>
    %143 = arith.mulf %139, %142 : vector<1x16xf32>
    %c0_54 = arith.constant 0 : index
    %c0_55 = arith.constant 0 : index
    %144 = vector.load %arg15[%c0_54, %c0_55] : memref<1x16xf32, #tpu.memory_space<vmem>>, vector<1x16xf32>
    %145 = arith.mulf %131, %143 : vector<1x16xf32>
    %146 = arith.subf %144, %145 : vector<1x16xf32>
    %147 = vector.shape_cast %2 : vector<2x1xi1> to vector<2x1xi1>
    %148 = vector.broadcast %147 : vector<2x1xi1> to vector<2x16xi1>
    %149 = vector.shape_cast %146 : vector<1x16xf32> to vector<1x16xf32>
    %150 = vector.broadcast %149 : vector<1x16xf32> to vector<2x16xf32>
    %151 = vector.shape_cast %143 : vector<1x16xf32> to vector<1x16xf32>
    %152 = vector.broadcast %151 : vector<1x16xf32> to vector<2x16xf32>
    %153 = arith.select %148, %150, %152 : vector<2x16xi1>, vector<2x16xf32>
    %c0_56 = arith.constant 0 : index
    %c0_57 = arith.constant 0 : index
    %154 = vector.load %arg13[%c0_56, %c0_57] : memref<16x256xbf16, #tpu.memory_space<vmem>>, vector<16x256xbf16>
    %155 = arith.extf %154 : vector<16x256xbf16> to vector<16x256xf32>
    %cst_58 = arith.constant dense<0.000000e+00> : vector<2x256xf32>
    %156 = tpu.matmul %153, %155, %cst_58 {dimension_numbers = #tpu.dot_dimension_numbers<[1], [0], [0], [1], [0, 0, 1, 1], [], []>} : vector<2x16xf32>, vector<16x256xf32>, vector<2x256xf32> -> vector<2x256xf32>
    %157 = vector.extract_strided_slice %156 {offsets = [0, 0], sizes = [1, 256], strides = [1, 1]} : vector<2x256xf32> to vector<1x256xf32>
    %158 = vector.broadcast %157 : vector<1x256xf32> to vector<2x256xf32>
    %159 = arith.mulf %113, %158 : vector<2x256xf32>
    %160 = vector.extract_strided_slice %156 {offsets = [1, 0], sizes = [1, 256], strides = [1, 1]} : vector<2x256xf32> to vector<1x256xf32>
    %161 = vector.broadcast %160 : vector<1x256xf32> to vector<2x256xf32>
    %162 = arith.addf %159, %161 : vector<2x256xf32>
    %cst_59 = arith.constant 0.000000e+00 : f32
    %163 = vector.broadcast %cst_59 : f32 to vector<2x256xf32>
    %164 = arith.maximumf %162, %163 : vector<2x256xf32>
    %165 = arith.truncf %164 : vector<2x256xf32> to vector<2x256xbf16>
    %c0_60 = arith.constant 0 : index
    %c0_61 = arith.constant 0 : index
    %166 = vector.load %arg16[%c0_60, %c0_61] : memref<256x128xbf16, #tpu.memory_space<vmem>>, vector<256x128xbf16>
    %cst_62 = arith.constant dense<0.000000e+00> : vector<2x128xf32>
    %167 = tpu.matmul %165, %166, %cst_62 {dimension_numbers = #tpu.dot_dimension_numbers<[1], [0], [0], [1], [0, 0, 1, 1], [], []>} : vector<2x256xbf16>, vector<256x128xbf16>, vector<2x128xf32> -> vector<2x128xf32>
    %cst_63 = arith.constant dense<0.000000e+00> : vector<128xf32>
    %168 = vector.multi_reduction <add>, %167, %cst_63 [0] : vector<2x128xf32> to vector<128xf32>
    %169 = vector.shape_cast %168 : vector<128xf32> to vector<1x128xf32>
    %170 = arith.mulf %167, %167 : vector<2x128xf32>
    %cst_64 = arith.constant dense<0.000000e+00> : vector<128xf32>
    %171 = vector.multi_reduction <add>, %170, %cst_64 [0] : vector<2x128xf32> to vector<128xf32>
    %172 = vector.shape_cast %171 : vector<128xf32> to vector<1x128xf32>
    %173 = vector.shape_cast %2 : vector<2x1xi1> to vector<2x1xi1>
    %174 = vector.broadcast %173 : vector<2x1xi1> to vector<2x128xi1>
    %175 = vector.shape_cast %172 : vector<1x128xf32> to vector<1x128xf32>
    %176 = vector.broadcast %175 : vector<1x128xf32> to vector<2x128xf32>
    %177 = vector.shape_cast %169 : vector<1x128xf32> to vector<1x128xf32>
    %178 = vector.broadcast %177 : vector<1x128xf32> to vector<2x128xf32>
    %179 = arith.select %174, %176, %178 : vector<2x128xi1>, vector<2x128xf32>
    %c0_65 = arith.constant 0 : index
    %c0_66 = arith.constant 0 : index
    %180 = vector.load %arg17[%c0_65, %c0_66] : memref<128x8xbf16, #tpu.memory_space<vmem>>, vector<128x8xbf16>
    %181 = arith.extf %180 : vector<128x8xbf16> to vector<128x8xf32>
    %cst_67 = arith.constant dense<0.000000e+00> : vector<2x8xf32>
    %182 = tpu.matmul %179, %181, %cst_67 {dimension_numbers = #tpu.dot_dimension_numbers<[1], [0], [0], [1], [0, 0, 1, 1], [], []>} : vector<2x128xf32>, vector<128x8xf32>, vector<2x8xf32> -> vector<2x8xf32>
    %183 = vector.extract_strided_slice %182 {offsets = [0, 0], sizes = [1, 8], strides = [1, 1]} : vector<2x8xf32> to vector<1x8xf32>
    %cst_68 = arith.constant 3.125000e-02 : f32
    %184 = vector.broadcast %cst_68 : f32 to vector<1x8xf32>
    %185 = arith.mulf %183, %184 : vector<1x8xf32>
    %186 = vector.extract_strided_slice %182 {offsets = [1, 0], sizes = [1, 8], strides = [1, 1]} : vector<2x8xf32> to vector<1x8xf32>
    %cst_69 = arith.constant 3.125000e-02 : f32
    %187 = vector.broadcast %cst_69 : f32 to vector<1x8xf32>
    %188 = arith.mulf %186, %187 : vector<1x8xf32>
    %189 = arith.mulf %185, %185 : vector<1x8xf32>
    %190 = arith.subf %188, %189 : vector<1x8xf32>
    %cst_70 = arith.constant 0.000000e+00 : f32
    %191 = vector.broadcast %cst_70 : f32 to vector<1x8xf32>
    %192 = arith.maximumf %190, %191 : vector<1x8xf32>
    %c0_71 = arith.constant 0 : index
    %c0_72 = arith.constant 0 : index
    %193 = vector.load %arg19[%c0_71, %c0_72] : memref<1x8xf32, #tpu.memory_space<vmem>>, vector<1x8xf32>
    %cst_73 = arith.constant 9.99999974E-6 : f32
    %194 = vector.broadcast %cst_73 : f32 to vector<1x8xf32>
    %195 = arith.addf %192, %194 : vector<1x8xf32>
    %196 = math.rsqrt %195 : vector<1x8xf32>
    %197 = arith.mulf %193, %196 : vector<1x8xf32>
    %c0_74 = arith.constant 0 : index
    %c0_75 = arith.constant 0 : index
    %198 = vector.load %arg20[%c0_74, %c0_75] : memref<1x8xf32, #tpu.memory_space<vmem>>, vector<1x8xf32>
    %199 = arith.mulf %185, %197 : vector<1x8xf32>
    %200 = arith.subf %198, %199 : vector<1x8xf32>
    %201 = vector.shape_cast %2 : vector<2x1xi1> to vector<2x1xi1>
    %202 = vector.broadcast %201 : vector<2x1xi1> to vector<2x8xi1>
    %203 = vector.shape_cast %200 : vector<1x8xf32> to vector<1x8xf32>
    %204 = vector.broadcast %203 : vector<1x8xf32> to vector<2x8xf32>
    %205 = vector.shape_cast %197 : vector<1x8xf32> to vector<1x8xf32>
    %206 = vector.broadcast %205 : vector<1x8xf32> to vector<2x8xf32>
    %207 = arith.select %202, %204, %206 : vector<2x8xi1>, vector<2x8xf32>
    %c0_76 = arith.constant 0 : index
    %c0_77 = arith.constant 0 : index
    %208 = vector.load %arg18[%c0_76, %c0_77] : memref<8x128xbf16, #tpu.memory_space<vmem>>, vector<8x128xbf16>
    %209 = arith.extf %208 : vector<8x128xbf16> to vector<8x128xf32>
    %cst_78 = arith.constant dense<0.000000e+00> : vector<2x128xf32>
    %210 = tpu.matmul %207, %209, %cst_78 {dimension_numbers = #tpu.dot_dimension_numbers<[1], [0], [0], [1], [0, 0, 1, 1], [], []>} : vector<2x8xf32>, vector<8x128xf32>, vector<2x128xf32> -> vector<2x128xf32>
    %211 = vector.extract_strided_slice %210 {offsets = [0, 0], sizes = [1, 128], strides = [1, 1]} : vector<2x128xf32> to vector<1x128xf32>
    %212 = vector.broadcast %211 : vector<1x128xf32> to vector<2x128xf32>
    %213 = arith.mulf %167, %212 : vector<2x128xf32>
    %214 = vector.extract_strided_slice %210 {offsets = [1, 0], sizes = [1, 128], strides = [1, 1]} : vector<2x128xf32> to vector<1x128xf32>
    %215 = vector.broadcast %214 : vector<1x128xf32> to vector<2x128xf32>
    %216 = arith.addf %213, %215 : vector<2x128xf32>
    %cst_79 = arith.constant 0.000000e+00 : f32
    %217 = vector.broadcast %cst_79 : f32 to vector<2x128xf32>
    %218 = arith.maximumf %216, %217 : vector<2x128xf32>
    %219 = arith.truncf %218 : vector<2x128xf32> to vector<2x128xbf16>
    %c0_80 = arith.constant 0 : index
    %c0_81 = arith.constant 0 : index
    %220 = vector.load %arg21[%c0_80, %c0_81] : memref<128x128xbf16, #tpu.memory_space<vmem>>, vector<128x128xbf16>
    %cst_82 = arith.constant dense<0.000000e+00> : vector<2x128xf32>
    %221 = tpu.matmul %219, %220, %cst_82 {dimension_numbers = #tpu.dot_dimension_numbers<[1], [0], [0], [1], [0, 0, 1, 1], [], []>} : vector<2x128xbf16>, vector<128x128xbf16>, vector<2x128xf32> -> vector<2x128xf32>
    %222 = math.tanh %221 : vector<2x128xf32>
    %c0_83 = arith.constant 0 : index
    %c0_84 = arith.constant 0 : index
    %223 = vector.load %arg22[%c0_83, %c0_84] : memref<2x128xf32, #tpu.memory_space<vmem>>, vector<2x128xf32>
    tpu.vector_store %arg22[%c0_83, %c0_84], %222 {strides = array<i32>} : memref<2x128xf32, #tpu.memory_space<vmem>>, vector<2x128xf32>,
    return
  }
}

</mosaic_0001>

<bundles_post_ra>
// kernel: forward.1
= control target key start
LH: loop header
LB: loop body
LE: loop exit
PB: predicated region body
PF: predicated region fallthrough
CT: control target
= control target key end

     0   :  { %s3976_s0 = inlined_call_operand.vmem [shape: bf16[2,8], index: 0, kind: input, shape index: {}]   ;;  %s3977_s1 = inlined_call_operand.hbm [shape: bf16[8,256], index: 1, kind: input, shape index: {}]   ;;  %s3978_s2 = inlined_call_operand.vmem [shape: bf16[256,64], index: 2, kind: input, shape index: {}]   ;;  %s3979_s3 = inlined_call_operand.hbm [shape: bf16[64,256], index: 3, kind: input, shape index: {}]   ;;  %s3980_s4 = inlined_call_operand.hbm [shape: f32[1,64], index: 4, kind: input, shape index: {}]   ;;  %s3981_s5 = inlined_call_operand.hbm [shape: f32[1,64], index: 5, kind: input, shape index: {}]   ;;  %s3982_s6 = inlined_call_operand.vmem [shape: bf16[256,256], index: 6, kind: input, shape index: {}]   ;;  %s3983_s7 = inlined_call_operand.vmem [shape: bf16[256,32], index: 7, kind: input, shape index: {}]   ;;  %s3984_s8 = inlined_call_operand.hbm [shape: bf16[32,256], index: 8, kind: input, shape index: {}]   ;;  %s3985_s9 = inlined_call_operand.hbm [shape: f32[1,32], index: 9, kind: input, shape index: {}]   ;;  %s3986_s10 = inlined_call_operand.hbm [shape: f32[1,32], index: 10, kind: input, shape index: {}]   ;;  %s3987_s11 = inlined_call_operand.vmem [shape: bf16[256,256], index: 11, kind: input, shape index: {}]   ;;  %s3988_s12 = inlined_call_operand.vmem [shape: bf16[256,16], index: 12, kind: input, shape index: {}]   ;;  %s3989_s13 = inlined_call_operand.vmem [shape: bf16[16,256], index: 13, kind: input, shape index: {}]   ;;  %s3990_s14 = inlined_call_operand.hbm [shape: f32[1,16], index: 14, kind: input, shape index: {}]   ;;  %s3991_s15 = inlined_call_operand.hbm [shape: f32[1,16], index: 15, kind: input, shape index: {}]   ;;  %s3992_s16 = inlined_call_operand.hbm [shape: bf16[256,128], index: 16, kind: input, shape index: {}]   ;;  %s3993_s17 = inlined_call_operand.vmem [shape: bf16[128,8], index: 17, kind: input, shape index: {}]   ;;  %s3994_s18 = inlined_call_operand.vmem [shape: bf16[8,128], index: 18, kind: input, shape index: {}]   ;;  %s3995_s19 = inlined_call_operand.hbm [shape: f32[1,8], index: 19, kind: input, shape index: {}]   ;;  %s3996_s20 = inlined_call_operand.hbm [shape: f32[1,8], index: 20, kind: input, shape index: {}]   ;;  %s3997_s21 = inlined_call_operand.vmem [shape: bf16[128,128], index: 21, kind: input, shape index: {}]   ;;  %s3998_s22 = inlined_call_operand.vmem [shape: f32[2,128], index: 22, kind: output, shape index: {}]  }
   0x1   :  { %4001 = sst [smem:[#allocation28_spill]] %s3976_s0 }
   0x2   :  { %4002 = sst [smem:[#allocation29_spill]] %s3977_s1 }
   0x3   :  { %4003 = sst [smem:[#allocation30_spill]] %s3978_s2 }
   0x4   :  { %4004 = sst [smem:[#allocation31_spill]] %s3979_s3 }
   0x5   :  { %4005 = sst [smem:[#allocation32_spill]] %s3980_s4 }
   0x6   :  { %4006 = sst [smem:[#allocation33_spill]] %s3981_s5 }
   0x7   :  { %4007 = sst [smem:[#allocation34_spill]] %s3982_s6 }
   0x8   :  { %27 = vsyncpa [#allocation3], 0 }
   0x9   :  { %28 = vsyncpa [#allocation5], 0 }
   0xa   :  { %29 = vsyncpa [#allocation8], 0 }
   0xb   :  { %30 = vsyncpa [#allocation11], 0 }
   0xc   :  { %31 = vsyncpa [#allocation14], 0 }
   0xd   :  { %32 = vsyncpa [#allocation17], 0 }
   0xe   :  { %33 = vsyncpa [#allocation20], 0  ;;  %s3244_s3 = smov [#allocation4]  }
   0xf   :  { %s53_s28 = sshll.u32 %s3244_s3, 4  ;;  %s54_s28 = int_to_ptr.vmem [resolvable:$true] %s53_s28 }
  0x10   :  { %s2998_s29 = scalar_lea.vmem %s54_s28, 1024  ;;  %p3003_p1 = scmp.lt.s32.totalorder %s54_s28, %s54_s28 }
  0x11   :  { %p2999_p0 = scmp.ne.s32.totalorder %s54_s28, %s2998_s29  ;;  %p3004_p2 = scmp.lt.s32.totalorder %s2998_s29, %s2998_s29 }
  0x13   :  { %p3005_p3 = por %p3004_p2, %p3003_p1 }
  0x15   :  { %p3006_p4 = pnand %p3005_p3, %p2999_p0 }
  0x17   :  { %3009 = shalt.err (!%p3006_p4)
}
  0x18   :  { %s3245_s30 = smov 128   ;;  %s3246_s4 = smov 8  }
  0x19   :  { %s4008_s1 = sld [smem:[#allocation31_spill]]  ;;  %s3247_s5 = smov [#allocation7]  }
  0x1a   :  { %s76_s24 = sshll.u32 %s3247_s5, 4  ;;  %s3248_s6 = smov [#allocation10]   ;;  %s77_s24 = int_to_ptr.vmem [resolvable:$true] %s76_s24 }
  0x1b   :  { %s102_s25 = sshll.u32 %s3248_s6, 4  ;;  %s3018_s26 = scalar_lea.vmem %s77_s24, 16  ;;  %s103_s25 = int_to_ptr.vmem [resolvable:$true] %s102_s25 }
  0x1c   :  { %p3019_p5 = scmp.ne.s32.totalorder %s77_s24, %s3018_s26  ;;  %s3022_s2 = scalar_lea.vmem %s77_s24, 32 }
  0x1d   :  { %p3023_p6 = scmp.lt.s32.totalorder %s77_s24, %s77_s24  ;;  %p3024_p7 = scmp.lt.s32.totalorder %s3022_s2, %s3018_s26 }
  0x1f   :  { %59 = dma.hbm_to_vmem [thread:$0]  %s4008_s1, 1024, %s54_s28, [#allocation5], %s3245_s30, %s3245_s30, %s3246_s4  }
  0x20   :  { %p3025_p8 = por %p3024_p7, %p3023_p6 }
  0x22   :  { %p3026_p9 = pnand %p3025_p8, %p3019_p5 }
  0x24   :  { %3029 = shalt.err (!%p3026_p9)
}
  0x25   :  { %s4009_s29 = sld [smem:[#allocation33_spill]]  ;;  %s3038_s0 = scalar_lea.vmem %s103_s25, 16 }
  0x26   :  { %p3039_p10 = scmp.ne.s32.totalorder %s103_s25, %s3038_s0  ;;  %s3042_s28 = scalar_lea.vmem %s103_s25, 32 }
  0x27   :  { %p3043_p11 = scmp.lt.s32.totalorder %s103_s25, %s103_s25  ;;  %p3044_p12 = scmp.lt.s32.totalorder %s3042_s28, %s3038_s0 }
  0x29   :  { %p3045_p13 = por %p3044_p12, %p3043_p11 }
  0x2b   :  { %79 = dma.hbm_to_vmem [thread:$0]  %s4009_s29, 16, %s77_s24, [#allocation8]  }
  0x2c   :  { %p3046_p0 = pnand %p3045_p13, %p3039_p10 }
  0x2e   :  { %3049 = shalt.err (!%p3046_p0)
}
  0x2f   :  { %105 = dma.hbm_to_vmem [thread:$0]  %s3985_s9, 16, %s103_s25, [#allocation11]  }
  0x30   :  { %s3249_s5 = smov [#allocation13]   ;;  %s3250_s26 = smov [#allocation16]  }
  0x31   :  { %s128_s6 = sshll.u32 %s3249_s5, 4  ;;  %s147_s2 = sshll.u32 %s3250_s26, 4  ;;  %s129_s6 = int_to_ptr.vmem [resolvable:$true] %s128_s6  ;;  %s148_s2 = int_to_ptr.vmem [resolvable:$true] %s147_s2 }
  0x32   :  { %s3058_s27 = scalar_lea.vmem %s129_s6, 16  ;;  %s3062_s24 = scalar_lea.vmem %s129_s6, 32 }
  0x33   :  { %p3059_p1 = scmp.ne.s32.totalorder %s129_s6, %s3058_s27  ;;  %p3063_p2 = scmp.lt.s32.totalorder %s129_s6, %s129_s6 }
  0x34   :  { %p3064_p3 = scmp.lt.s32.totalorder %s3062_s24, %s3058_s27 }
  0x36   :  { %p3065_p4 = por %p3064_p3, %p3063_p2 }
  0x38   :  { %p3066_p5 = pnand %p3065_p4, %p3059_p1 }
  0x3a   :  { %3069 = shalt.err (!%p3066_p5)
}
  0x3b   :  { %131 = dma.hbm_to_vmem [thread:$0]  %s3990_s14, 16, %s129_s6, [#allocation14]  }
  0x3c   :  { %s3078_s0 = scalar_lea.vmem %s148_s2, 2048  ;;  %p3083_p7 = scmp.lt.s32.totalorder %s148_s2, %s148_s2 }
  0x3d   :  { %p3079_p6 = scmp.ne.s32.totalorder %s148_s2, %s3078_s0  ;;  %p3084_p8 = scmp.lt.s32.totalorder %s3078_s0, %s3078_s0 }
  0x3f   :  { %p3085_p9 = por %p3084_p8, %p3083_p7 }
  0x41   :  { %p3086_p10 = pnand %p3085_p9, %p3079_p6 }
  0x43   :  { %3089 = shalt.err (!%p3086_p10)
}
  0x44   :  { %s3251_s9 = smov 64   ;;  %s3252_s25 = smov 4  }
  0x45   :  { %153 = dma.hbm_to_vmem [thread:$0]  %s3992_s16, 2048, %s148_s2, [#allocation17], %s3251_s9, %s3251_s9, %s3252_s25  }
  0x46   :  { %s3253_s1 = smov [#allocation2]   ;;  %s3254_s26 = smov [#allocation6]  }
  0x47   :  { %s42_s5 = sshll.u32 %s3253_s1, 4  ;;  %s66_s27 = sshll.u32 %s3254_s26, 4  ;;  %s43_s5 = int_to_ptr.vmem [resolvable:$true] %s42_s5  ;;  %s67_s27 = int_to_ptr.vmem [resolvable:$true] %s66_s27 }
  0x48   :  { %s3098_s14 = scalar_lea.vmem %s43_s5, 128  ;;  %p3103_p12 = scmp.lt.s32.totalorder %s43_s5, %s43_s5 }
  0x49   :  { %p3099_p11 = scmp.ne.s32.totalorder %s43_s5, %s3098_s14  ;;  %p3104_p13 = scmp.lt.s32.totalorder %s3098_s14, %s3098_s14 }
  0x4b   :  { %p3105_p0 = por %p3104_p13, %p3103_p12 }
  0x4d   :  { %p3106_p1 = pnand %p3105_p0, %p3099_p11 }
  0x4f   :  { %3109 = shalt.err (!%p3106_p1)
}
  0x50   :  { %s4010_s3 = sld [smem:[#allocation29_spill]]  ;;  %s3118_s29 = scalar_lea.vmem %s67_s27, 16 }
  0x51   :  { %p3119_p2 = scmp.ne.s32.totalorder %s67_s27, %s3118_s29  ;;  %s3122_s16 = scalar_lea.vmem %s67_s27, 32 }
  0x52   :  { %p3123_p3 = scmp.lt.s32.totalorder %s67_s27, %s67_s27  ;;  %p3124_p4 = scmp.lt.s32.totalorder %s3122_s16, %s3118_s29 }
  0x54   :  { %p3125_p5 = por %p3124_p4, %p3123_p3 }
  0x56   :  { %45 = dma.hbm_to_vmem [thread:$0]  %s4010_s3, 128, %s43_s5, [#allocation3]  }
  0x57   :  { %p3126_p6 = pnand %p3125_p5, %p3119_p2 }
  0x59   :  { %3129 = shalt.err (!%p3126_p6)
}
  0x5a   :  { %s4011_s9 = sld [smem:[#allocation32_spill]]  ;;  %s3255_s25 = smov [#allocation9]  }
  0x5b   :  { %s89_s28 = sshll.u32 %s3255_s25, 4  ;;  %s3256_s23 = smov [#allocation12]   ;;  %s90_s28 = int_to_ptr.vmem [resolvable:$true] %s89_s28 }
  0x5c   :  { %s112_s1 = sshll.u32 %s3256_s23, 4  ;;  %s3138_s26 = scalar_lea.vmem %s90_s28, 512  ;;  %s113_s1 = int_to_ptr.vmem [resolvable:$true] %s112_s1 }
  0x5d   :  { %p3139_p7 = scmp.ne.s32.totalorder %s90_s28, %s3138_s26  ;;  %p3143_p8 = scmp.lt.s32.totalorder %s90_s28, %s90_s28 }
  0x5e   :  { %p3144_p9 = scmp.lt.s32.totalorder %s3138_s26, %s3138_s26 }
  0x60   :  { %69 = dma.hbm_to_vmem [thread:$0]  %s4011_s9, 16, %s67_s27, [#allocation5]  }
  0x61   :  { %p3145_p10 = por %p3144_p9, %p3143_p8 }
  0x63   :  { %p3146_p11 = pnand %p3145_p10, %p3139_p7 }
  0x65   :  { %3149 = shalt.err (!%p3146_p11)
}
  0x66   :  { %95 = dma.hbm_to_vmem [thread:$0]  %s3984_s8, 512, %s90_s28, [#allocation8], %s3245_s30, %s3245_s30, %s3246_s4  }
  0x67   :  { %s3158_s27 = scalar_lea.vmem %s113_s1, 16  ;;  %s3162_s6 = scalar_lea.vmem %s113_s1, 32 }
  0x68   :  { %p3159_p12 = scmp.ne.s32.totalorder %s113_s1, %s3158_s27  ;;  %p3163_p13 = scmp.lt.s32.totalorder %s113_s1, %s113_s1 }
  0x69   :  { %p3164_p0 = scmp.lt.s32.totalorder %s3162_s6, %s3158_s27 }
  0x6b   :  { %p3165_p1 = por %p3164_p0, %p3163_p13 }
  0x6d   :  { %p3166_p2 = pnand %p3165_p1, %p3159_p12 }
  0x6f   :  { %3169 = shalt.err (!%p3166_p2)
}
  0x70   :  { %115 = dma.hbm_to_vmem [thread:$0]  %s3986_s10, 16, %s113_s1, [#allocation11]  }
  0x71   :  { %s3257_s29 = smov [#allocation15]   ;;  %s3258_s2 = smov [#allocation18]  }
  0x72   :  { %s138_s16 = sshll.u32 %s3257_s29, 4  ;;  %s164_s0 = sshll.u32 %s3258_s2, 4  ;;  %s139_s16 = int_to_ptr.vmem [resolvable:$true] %s138_s16  ;;  %s165_s0 = int_to_ptr.vmem [resolvable:$true] %s164_s0 }
  0x73   :  { %s3178_s9 = scalar_lea.vmem %s139_s16, 16  ;;  %s3182_s8 = scalar_lea.vmem %s139_s16, 32 }
  0x74   :  { %p3179_p3 = scmp.ne.s32.totalorder %s139_s16, %s3178_s9  ;;  %p3183_p4 = scmp.lt.s32.totalorder %s139_s16, %s139_s16 }
  0x75   :  { %p3184_p5 = scmp.lt.s32.totalorder %s3182_s8, %s3178_s9 }
  0x77   :  { %p3185_p6 = por %p3184_p5, %p3183_p4 }
  0x79   :  { %p3186_p7 = pnand %p3185_p6, %p3179_p3 }
  0x7b   :  { %3189 = shalt.err (!%p3186_p7)
}
  0x7c   :  { %141 = dma.hbm_to_vmem [thread:$0]  %s3991_s15, 16, %s139_s16, [#allocation14]  }
  0x7d   :  { %s3198_s25 = scalar_lea.vmem %s165_s0, 16  ;;  %s3202_s10 = scalar_lea.vmem %s165_s0, 32 }
  0x7e   :  { %p3199_p8 = scmp.ne.s32.totalorder %s165_s0, %s3198_s25  ;;  %p3203_p9 = scmp.lt.s32.totalorder %s165_s0, %s165_s0 }
  0x7f   :  { %p3204_p10 = scmp.lt.s32.totalorder %s3202_s10, %s3198_s25 }
  0x81   :  { %p3205_p11 = por %p3204_p10, %p3203_p9 }
  0x83   :  { %p3206_p12 = pnand %p3205_p11, %p3199_p8 }
  0x85   :  { %3209 = shalt.err (!%p3206_p12)
}
  0x86   :  { %167 = dma.hbm_to_vmem [thread:$0]  %s3995_s19, 16, %s165_s0, [#allocation17]  }
  0x87   :  { %s3259_s1 = smov [#allocation19]  }
  0x88   :  { %s174_s26 = sshll.u32 %s3259_s1, 4  ;;  %s175_s26 = int_to_ptr.vmem [resolvable:$true] %s174_s26 }
  0x89   :  { %s3218_s5 = scalar_lea.vmem %s175_s26, 16  ;;  %s3222_s14 = scalar_lea.vmem %s175_s26, 32 }
  0x8a   :  { %p3219_p13 = scmp.ne.s32.totalorder %s175_s26, %s3218_s5  ;;  %p3223_p0 = scmp.lt.s32.totalorder %s175_s26, %s175_s26 }
  0x8b   :  { %p3224_p1 = scmp.lt.s32.totalorder %s3222_s14, %s3218_s5 }
  0x8d   :  { %p3225_p2 = por %p3224_p1, %p3223_p0 }
  0x8f   :  { %p3226_p3 = pnand %p3225_p2, %p3219_p13 }
  0x91   :  { %3229 = shalt.err (!%p3226_p3)
}
  0x92   :  { %177 = dma.hbm_to_vmem [thread:$0]  %s3996_s20, 16, %s175_s26, [#allocation20]  }
  0x93   :  { %3230 = dma.done.wait [#allocation3], 128  }
  0x94   :  { %3231 = vsyncadd [#allocation3], 4294967168 }
  0x95   :  { %3232 = dma.done.wait [#allocation5], 1040  }
  0x96   :  { %3233 = vsyncadd [#allocation5], 4294966256 }
  0x97   :  { %3234 = dma.done.wait [#allocation8], 528  }
  0x98   :  { %3235 = vsyncadd [#allocation8], 4294966768 }
  0x99   :  { %3236 = dma.done.wait [#allocation11], 32  }
  0x9a   :  { %3237 = vsyncadd [#allocation11], 4294967264 }
  0x9b   :  { %3238 = dma.done.wait [#allocation14], 32  }
  0x9c   :  { %3239 = vsyncadd [#allocation14], 4294967264 }
  0x9d   :  { %3240 = dma.done.wait [#allocation17], 2064  }
  0x9e   :  { %3241 = vsyncadd [#allocation17], 4294965232 }
  0x9f   :  { %3242 = dma.done.wait [#allocation20], 16  }
  0xa0   :  { %3243 = vsyncadd [#allocation20], 4294967280  ;;  %v3260_v0 = vmov 0   ;;  %v221_v1 = vld [vmem:[#allocation2] sm:$0xff]  ;;  %vm231_vm0 = vcmask 1043456   ;;  %s4012_s6 = sld [smem:[#allocation30_spill]] }
  0xa1   :  { %270 = vmatprep.mubr.bf16.mxu0 %v3260_v0  ;;  %v2252_v3 = vcombine.high %v221_v1, %v221_v1  ;;  %v2251_v4 = vcombine.low %v221_v1, %v221_v1  ;;  %s4013_s30 = sld [smem:[#allocation28_spill]]  ;;  %vm227_vm1 = vcmask 64512   ;;  %vm279_vm2 = vcmask 1041408  }
  0xa2   :  { %s4014_s28 = sld [smem:[#allocation34_spill]]  ;;  %vm516_vm4 = vcmask 523264   ;;  %vm1070_vm5 = vcmask 261120   ;;  %vm1618_vm6 = vcmask 130048   ;;  %vm3263_vm7 = vmmov 0  }
  0xa3   :  { %2253 = vmatprep.subr.msk.bf16.mxu0 %vm231_vm0, %v2252_v3  ;;  %v233_v14 = vsel %vm231_vm0, %v2251_v4, 0 }
  0xa4   :  { %253 = vmatpush1.bf16.msra.mxu0 %v233_v14 }
  0xa6   :  { %v2585_v2 = vld [vmem:[%s4012_s6 + $0x78] sm:$0xff]   ;;  %v2584_v8 = vld [vmem:[%s4012_s6 + $0x70] sm:$0xff]   ;;  %v2583_v13 = vld [vmem:[%s4012_s6 + $0x68] sm:$0xff]  }
  0xa7   :  { %v2409_v5 = vunpack.c.l.bf16 %v2585_v2  ;;  %v2410_v6 = vunpack.c.h.bf16 %v2585_v2  ;;  %v2577_v7 = vld [vmem:[%s4012_s6 + $0x38] sm:$0xff]   ;;  %v2576_v9 = vld [vmem:[%s4012_s6 + $0x30] sm:$0xff]   ;;  %v220_v10 = vld [vmem:[%s4013_s30] sm:$0x1]  ;;  %v2406_v15 = vunpack.c.h.bf16 %v2584_v8  ;;  %v2405_v18 = vunpack.c.l.bf16 %v2584_v8 }
  0xa8   :  { %v2377_v11 = vunpack.c.l.bf16 %v2577_v7  ;;  %v2378_v12 = vunpack.c.h.bf16 %v2577_v7  ;;  %v2575_v16 = vld [vmem:[%s4012_s6 + $0x28] sm:$0xff]   ;;  %v2374_v17 = vunpack.c.h.bf16 %v2576_v9  ;;  %v2373_v19 = vunpack.c.l.bf16 %v2576_v9  ;;  %2254 = vmatmul.mubr.msk.bf16.vlgmr.msra.gmra.mxu0 %vm227_vm1, %v220_v10  ;;  %v2582_v24 = vld [vmem:[%s4012_s6 + $0x60] sm:$0xff]   ;;  %v2581_v30 = vld [vmem:[%s4012_s6 + $0x58] sm:$0xff]  }
  0xa9   :  { %2623 = vmatprep.subr.mxu1 %v2410_v6  ;;  %v2402_v20 = vunpack.c.h.bf16 %v2583_v13  ;;  %v2370_v21 = vunpack.c.h.bf16 %v2575_v16  ;;  %v2401_v22 = vunpack.c.l.bf16 %v2583_v13  ;;  %v2369_v23 = vunpack.c.l.bf16 %v2575_v16  ;;  %v2574_v26 = vld [vmem:[%s4012_s6 + $0x20] sm:$0xff]   ;;  %v2573_v32 = vld [vmem:[%s4012_s6 + $0x18] sm:$0xff]   ;;  %v2580_v36 = vld [vmem:[%s4012_s6 + $0x50] sm:$0xff]  }
  0xaa   :  { %2624 = vmatpush3.msra.mxu1 %v2378_v12  ;;  %v2398_v25 = vunpack.c.h.bf16 %v2582_v24  ;;  %v2366_v27 = vunpack.c.h.bf16 %v2574_v26  ;;  %v2397_v28 = vunpack.c.l.bf16 %v2582_v24  ;;  %v2365_v29 = vunpack.c.l.bf16 %v2574_v26  ;;  %v2572_v38 = vld [vmem:[%s4012_s6 + $0x10] sm:$0xff]   ;;  %v2579_v42 = vld [vmem:[%s4012_s6 + $0x48] sm:$0xff]   ;;  %v2578_v46 = vld [vmem:[%s4012_s6 + $0x40] sm:$0xff]  }
  0xab   :  { %2625 = vmatprep.subr.mxu1 %v2409_v5  ;;  %v2394_v31 = vunpack.c.h.bf16 %v2581_v30  ;;  %v2362_v33 = vunpack.c.h.bf16 %v2573_v32  ;;  %v2393_v34 = vunpack.c.l.bf16 %v2581_v30  ;;  %v2361_v35 = vunpack.c.l.bf16 %v2573_v32  ;;  %v2571_v43 = vld [vmem:[%s4012_s6 + $0x8] sm:$0xff]   ;;  %v2348_v48 = vld [vmem:[%s4012_s6] sm:$0xff]  }
  0xac   :  { %2626 = vmatpush3.msra.mxu1 %v2377_v11  ;;  %v2390_v37 = vunpack.c.h.bf16 %v2580_v36  ;;  %v2358_v39 = vunpack.c.h.bf16 %v2572_v38  ;;  %v2389_v40 = vunpack.c.l.bf16 %v2580_v36  ;;  %v2357_v41 = vunpack.c.l.bf16 %v2572_v38 }
  0xad   :  { %2627 = vmatprep.subr.mxu1 %v2406_v15  ;;  %v2386_v44 = vunpack.c.h.bf16 %v2579_v42  ;;  %v2354_v45 = vunpack.c.h.bf16 %v2571_v43  ;;  %v2385_v47 = vunpack.c.l.bf16 %v2579_v42  ;;  %v2353_v49 = vunpack.c.l.bf16 %v2571_v43  ;;  %v494_v43 = vld [vmem:[#allocation4 + $0x10] sm:$0xff] }
  0xae   :  { %2628 = vmatpush3.msra.mxu1 %v2374_v17  ;;  %v2382_v50 = vunpack.c.h.bf16 %v2578_v46  ;;  %v2350_v51 = vunpack.c.h.bf16 %v2348_v48  ;;  %v2381_v52 = vunpack.c.l.bf16 %v2578_v46  ;;  %v2349_v53 = vunpack.c.l.bf16 %v2348_v48  ;;  %v493_v46 = vld [vmem:[#allocation4 + $0x8] sm:$0xff] }
  0xaf   :  { %2629 = vmatprep.subr.mxu1 %v2405_v18  ;;  %v217_v11 = vlaneseq  ;;  %v502_v48 = vunpack.c.l.bf16 %v493_v46 }
  0xb0   :  { %2630 = vmatpush3.msra.mxu1 %v2373_v19 }
  0xb1   :  { %2631 = vmatprep.subr.mxu1 %v2402_v20  ;;  %v3487_v16 = vshrl.u32 %v217_v11, 7  ;;  %v2892_v11 = vld [vmem:[%s4014_s28 + $0xd4] ss:$8 sps:$4 sm:$0xff]  }
  0xb2   :  { %2632 = vmatpush3.msra.mxu1 %v2370_v21 }
  0xb3   :  { %2633 = vmatprep.subr.mxu1 %v2401_v22  ;;  %vm219_vm3 = vcmp.eq.s32.totalorder %v3487_v16, 1 }
  0xb4   :  { %2634 = vmatpush3.msra.mxu1 %v2369_v23 }
  0xb5   :  { %2635 = vmatprep.subr.mxu1 %v2398_v25 }
  0xb6   :  { %2636 = vmatpush3.msra.mxu1 %v2366_v27 }
  0xb7   :  { %2637 = vmatprep.subr.mxu1 %v2397_v28  ;;  %v499_v28 = vld [vmem:[#allocation4 + $0x38] sm:$0xff] }
  0xb8   :  { %2638 = vmatpush3.msra.mxu1 %v2365_v29  ;;  %v515_v29 = vunpack.c.h.bf16 %v499_v28  ;;  %v514_v30 = vunpack.c.l.bf16 %v499_v28 }
  0xb9   :  { %2639 = vmatprep.subr.mxu1 %v2394_v31  ;;  %v498_v31 = vld [vmem:[#allocation4 + $0x30] sm:$0xff] }
  0xba   :  { %2640 = vmatpush3.msra.mxu1 %v2362_v33  ;;  %v513_v32 = vunpack.c.h.bf16 %v498_v31  ;;  %v512_v33 = vunpack.c.l.bf16 %v498_v31 }
  0xbb   :  { %2641 = vmatprep.subr.mxu1 %v2393_v34  ;;  %v497_v34 = vld [vmem:[#allocation4 + $0x28] sm:$0xff] }
  0xbc   :  { %2642 = vmatpush3.msra.mxu1 %v2361_v35  ;;  %v511_v35 = vunpack.c.h.bf16 %v497_v34  ;;  %v510_v36 = vunpack.c.l.bf16 %v497_v34  ;;  %v455_v34 = vld [vmem:[#allocation6] sm:$0x1] }
  0xbd   :  { %2643 = vmatprep.subr.mxu1 %v2390_v37  ;;  %v496_v37 = vld [vmem:[#allocation4 + $0x20] sm:$0xff] }
  0xbe   :  { %2644 = vmatpush3.msra.mxu1 %v2358_v39  ;;  %v509_v38 = vunpack.c.h.bf16 %v496_v37  ;;  %v508_v39 = vunpack.c.l.bf16 %v496_v37  ;;  %v476_v37 = vld [vmem:[#allocation7] sm:$0x1] }
  0xbf   :  { %2645 = vmatprep.subr.mxu1 %v2389_v40  ;;  %v495_v40 = vld [vmem:[#allocation4 + $0x18] sm:$0xff] }
  0xc0   :  { %2646 = vmatpush3.msra.mxu1 %v2357_v41  ;;  %v507_v41 = vunpack.c.h.bf16 %v495_v40  ;;  %v506_v42 = vunpack.c.l.bf16 %v495_v40 }
  0xc1   :  { %2647 = vmatprep.subr.mxu1 %v2386_v44  ;;  %v505_v44 = vunpack.c.h.bf16 %v494_v43 }
  0xc2   :  { %2648 = vmatpush3.msra.mxu1 %v2354_v45  ;;  %v504_v45 = vunpack.c.l.bf16 %v494_v43 }
  0xc3   :  { %2649 = vmatprep.subr.mxu1 %v2385_v47  ;;  %v503_v47 = vunpack.c.h.bf16 %v493_v46  ;;  %v2904_v46 = vld [vmem:[%s4014_s28 + $0x94] ss:$8 sps:$4 sm:$0xff]  }
  0xc4   :  { %2650 = vmatpush3.msra.mxu1 %v2353_v49  ;;  %v492_v49 = vld [vmem:[#allocation4] sm:$0xff] }
  0xc5   :  { %2651 = vmatprep.subr.mxu1 %v2382_v50  ;;  %v501_v50 = vunpack.c.h.bf16 %v492_v49 }
  0xc6   :  { %2652 = vmatpush3.msra.mxu1 %v2350_v51  ;;  %v500_v51 = vunpack.c.l.bf16 %v492_v49  ;;  %v2905_v49 = vld [vmem:[%s4014_s28 + $0x80] ss:$8 sps:$4 sm:$0xff]  }
  0xc7   :  { %2653 = vmatprep.subr.mxu1 %v2381_v52  ;;  %v3261_v52 = vmov 0.0  }
  0xc8   :  { %2654 = vmatpush3.msra.mxu1 %v2349_v53  ;;  %v2860_v53 = vld [vmem:[%s4014_s28 + $0x70] ss:$8 sps:$4 sm:$0xff]  }
  0xc9   :  { %536 = vmatprep.subr.mxu1 %v515_v29 }
 0x168   :  { %v3473_v54 = vpop.f32.mrf.mxu0 }
 0x169   :  { %v280_v55 = vsel %vm279_vm2, %v3473_v54, 0.0  ;;  %v294_v56 = vmul.f32 %v3473_v54, %v3473_v54 }
 0x16a   :  { %v281_v57 = vrot.slane %v280_v55, 4  ;;  %v3479_v58 = vpop.f32.mrf.mxu0 }
 0x16b   :  { %v296_v59 = vsel %vm279_vm2, %v294_v56, 0.0  ;;  %v287_v60 = vsel %vm279_vm2, %v3479_v58, 0.0  ;;  %v295_v61 = vmul.f32 %v3479_v58, %v3479_v58  ;;  %v2865_v56 = vld [vmem:[%s4014_s28 + $0x64] ss:$8 sps:$4 sm:$0xff]  }
 0x16c   :  { %v282_v62 = vadd.f32 %v281_v57, %v280_v55  ;;  %v297_v63 = vrot.slane %v296_v59, 4  ;;  %v288_v0 = vrot.slane %v287_v60, 4  ;;  %v276_v1 = vpop.f32.mrf.mxu0  ;;  %v2862_v55 = vld [vmem:[%s4014_s28 + $0x74] ss:$8 sps:$4 sm:$0xff]   ;;  %v2863_v57 = vld [vmem:[%s4014_s28 + $0x60] ss:$8 sps:$4 sm:$0xff]  }
 0x16d   :  { %v303_v2 = vsel %vm279_vm2, %v295_v61, 0.0  ;;  %807 = vmatprep.subr.bf16.mxu0 %v2862_v55  ;;  %v2871_v61 = vld [vmem:[%s4014_s28 + $0x44] ss:$8 sps:$4 sm:$0xff]  }
 0x16e   :  { %v283_v3 = vrot.slane %v282_v62, 2  ;;  %v298_v4 = vadd.f32 %v297_v63, %v296_v59  ;;  %v289_v5 = vadd.f32 %v288_v0, %v287_v60  ;;  %v304_v6 = vrot.slane %v303_v2, 4  ;;  %v277_v7 = vpop.f32.mrf.mxu0  ;;  %808 = vmatpush1.bf16.msra.mxu0 %v2860_v53  ;;  %v2868_v59 = vld [vmem:[%s4014_s28 + $0x54] ss:$8 sps:$4 sm:$0xff]   ;;  %v2866_v60 = vld [vmem:[%s4014_s28 + $0x50] ss:$8 sps:$4 sm:$0xff]  }
 0x16f   :  { %809 = vmatprep.subr.bf16.mxu0 %v2865_v56  ;;  %v2874_v63 = vld [vmem:[%s4014_s28 + $0x34] ss:$8 sps:$4 sm:$0xff]   ;;  %v2872_v0 = vld [vmem:[%s4014_s28 + $0x30] ss:$8 sps:$4 sm:$0xff]   ;;  %v2877_v1 = vld [vmem:[%s4014_s28 + $0x24] ss:$8 sps:$4 sm:$0xff]  }
 0x170   :  { %v299_v8 = vrot.slane %v298_v4, 2  ;;  %v290_v9 = vrot.slane %v289_v5, 2  ;;  %v305_v10 = vadd.f32 %v304_v6, %v303_v2  ;;  %v284_v12 = vadd.f32 %v283_v3, %v282_v62  ;;  %v2869_v62 = vld [vmem:[%s4014_s28 + $0x40] ss:$8 sps:$4 sm:$0xff]   ;;  %v2880_v3 = vld [vmem:[%s4014_s28 + $0x14] ss:$8 sps:$4 sm:$0xff]  }
 0x171   :  { %v2875_v2 = vld [vmem:[%s4014_s28 + $0x20] ss:$8 sps:$4 sm:$0xff]   ;;  %v2886_v7 = vld [vmem:[%s4014_s28 + $0xf4] ss:$8 sps:$4 sm:$0xff]  }
 0x172   :  { %v291_v13 = vadd.f32 %v290_v9, %v289_v5  ;;  %v306_v14 = vrot.slane %v305_v10, 2  ;;  %v300_v15 = vadd.f32 %v299_v8, %v298_v4  ;;  %v285_v20 = vrot.slane %v284_v12, 1  ;;  %810 = vmatpush1.bf16.msra.mxu0 %v2863_v57  ;;  %v2878_v4 = vld [vmem:[%s4014_s28 + $0x10] ss:$8 sps:$4 sm:$0xff]   ;;  %v2883_v5 = vld [vmem:[%s4014_s28 + $0x4] ss:$8 sps:$4 sm:$0xff]  }
 0x173   :  { %811 = vmatprep.subr.bf16.mxu0 %v2868_v59  ;;  %v2881_v6 = vld [vmem:[%s4014_s28] ss:$8 sps:$4 sm:$0xff]   ;;  %v2884_v8 = vld [vmem:[%s4014_s28 + $0xf0] ss:$8 sps:$4 sm:$0xff]   ;;  %v2889_v9 = vld [vmem:[%s4014_s28 + $0xe4] ss:$8 sps:$4 sm:$0xff]  }
 0x174   :  { %v292_v17 = vrot.slane %v291_v13, 1  ;;  %v307_v18 = vadd.f32 %v306_v14, %v305_v10  ;;  %v301_v19 = vrot.slane %v300_v15, 1  ;;  %v286_v25 = vadd.f32 %v285_v20, %v284_v12  ;;  %v2887_v10 = vld [vmem:[%s4014_s28 + $0xe0] ss:$8 sps:$4 sm:$0xff]   ;;  %v2890_v12 = vld [vmem:[%s4014_s28 + $0xd0] ss:$8 sps:$4 sm:$0xff]  }
 0x175   :  { %v2893_v14 = vld [vmem:[%s4014_s28 + $0xc0] ss:$8 sps:$4 sm:$0xff]   ;;  %v2599_v53 = vld [vmem:[%s3983_s7 + $0x70] sm:$0xff]  }
 0x176   :  { %v308_v21 = vrot.slane %v307_v18, 1  ;;  %v302_v22 = vadd.f32 %v301_v19, %v300_v15  ;;  %v293_v23 = vadd.f32 %v292_v17, %v291_v13  ;;  %812 = vmatpush1.bf16.msra.mxu0 %v2866_v60  ;;  %v2895_v13 = vld [vmem:[%s4014_s28 + $0xc4] ss:$8 sps:$4 sm:$0xff]   ;;  %v2898_v15 = vld [vmem:[%s4014_s28 + $0xb4] ss:$8 sps:$4 sm:$0xff]  }
 0x177   :  { %813 = vmatprep.subr.bf16.mxu0 %v2871_v61  ;;  %v2896_v17 = vld [vmem:[%s4014_s28 + $0xb0] ss:$8 sps:$4 sm:$0xff]   ;;  %v2470_v61 = vunpack.c.h.bf16 %v2599_v53 }
 0x178   :  { %v309_v24 = vadd.f32 %v308_v21, %v307_v18  ;;  %v312_v27 = vsel %vm219_vm3, %v302_v22, %v286_v25  ;;  %v2591_v59 = vld [vmem:[%s3983_s7 + $0x30] sm:$0xff]  }
 0x17a   :  { %v313_v26 = vsel %vm219_vm3, %v309_v24, %v293_v23  ;;  %814 = vmatpush1.bf16.msra.mxu0 %v2869_v62  ;;  %v2438_v62 = vunpack.c.h.bf16 %v2591_v59 }
 0x17b   :  { %442 = vmatprep.mubr.f32.mxu1 %v313_v26  ;;  %815 = vmatprep.subr.bf16.mxu0 %v2874_v63  ;;  %v2598_v63 = vld [vmem:[%s3983_s7 + $0x68] sm:$0xff]  }
 0x17c   :  { %443 = vmatmul.mubr.f32.vlgmr.msra.gmra.mxu1 %v312_v27  ;;  %v3262_v27 = vmov 1966171168  }
 0x17d   :  { %537 = vmatpush1.msra.mxu1 %v514_v30  ;;  %584 = vmatprep.mubr.f32.mxu1 %v3261_v52  ;;  %v460_v28 = vunpack.c.l.s4 %v3262_v27  ;;  %v2596_v27 = vld [vmem:[%s3983_s7 + $0x58] sm:$0xff]  }
 0x17e   :  { %538 = vmatprep.subr.mxu1 %v513_v32  ;;  %816 = vmatpush1.bf16.msra.mxu0 %v2872_v0  ;;  %v2469_v0 = vunpack.c.l.bf16 %v2599_v53 }
 0x17f   :  { %539 = vmatpush1.msra.mxu1 %v512_v33  ;;  %817 = vmatprep.subr.bf16.mxu0 %v2877_v1  ;;  %v461_v29 = vunpack.c.0.s8 %v460_v28  ;;  %v2590_v1 = vld [vmem:[%s3983_s7 + $0x28] sm:$0xff]   ;;  %v2458_v28 = vunpack.c.h.bf16 %v2596_v27 }
 0x180   :  { %540 = vmatprep.subr.mxu1 %v511_v35 }
 0x181   :  { %541 = vmatpush1.msra.mxu1 %v510_v36  ;;  %v3574_v30 = vsub.s32 %v461_v29, %v3487_v16  ;;  %v2588_v29 = vld [vmem:[%s3983_s7 + $0x18] sm:$0xff]  }
 0x182   :  { %542 = vmatprep.subr.mxu1 %v509_v38  ;;  %818 = vmatpush1.bf16.msra.mxu0 %v2875_v2  ;;  %v3579_v38 = vsub.s32 0, %v3487_v16  ;;  %v2437_v2 = vunpack.c.l.bf16 %v2591_v59 }
 0x183   :  { %543 = vmatpush1.msra.mxu1 %v508_v39  ;;  %819 = vmatprep.subr.bf16.mxu0 %v2880_v3  ;;  %v2466_v3 = vunpack.c.h.bf16 %v2598_v63 }
 0x184   :  { %544 = vmatprep.subr.mxu1 %v507_v41 }
 0x185   :  { %545 = vmatpush1.msra.mxu1 %v506_v42 }
 0x186   :  { %546 = vmatprep.subr.mxu1 %v505_v44  ;;  %820 = vmatpush1.bf16.msra.mxu0 %v2878_v4  ;;  %v2901_v44 = vld [vmem:[%s4014_s28 + $0xa4] ss:$8 sps:$4 sm:$0xff]   ;;  %v2434_v4 = vunpack.c.h.bf16 %v2590_v1 }
 0x187   :  { %547 = vmatpush1.msra.mxu1 %v504_v45  ;;  %821 = vmatprep.subr.bf16.mxu0 %v2883_v5  ;;  %v2899_v45 = vld [vmem:[%s4014_s28 + $0xa0] ss:$8 sps:$4 sm:$0xff]   ;;  %v2465_v5 = vunpack.c.l.bf16 %v2598_v63 }
 0x188   :  { %548 = vmatprep.subr.mxu1 %v503_v47  ;;  %v2902_v47 = vld [vmem:[%s4014_s28 + $0x90] ss:$8 sps:$4 sm:$0xff]  }
 0x189   :  { %549 = vmatpush1.msra.mxu1 %v502_v48  ;;  %v2907_v48 = vld [vmem:[%s4014_s28 + $0x84] ss:$8 sps:$4 sm:$0xff]  }
 0x18a   :  { %550 = vmatprep.subr.mxu1 %v501_v50  ;;  %822 = vmatpush1.bf16.msra.mxu0 %v2881_v6  ;;  %v2600_v50 = vld [vmem:[%s3983_s7 + $0x78] sm:$0xff]   ;;  %v2433_v6 = vunpack.c.l.bf16 %v2590_v1 }
 0x18b   :  { %551 = vmatpush1.msra.mxu1 %v500_v51  ;;  %823 = vmatprep.subr.bf16.mxu0 %v2886_v7  ;;  %v2592_v51 = vld [vmem:[%s3983_s7 + $0x38] sm:$0xff]   ;;  %v2474_v55 = vunpack.c.h.bf16 %v2600_v50  ;;  %v2473_v57 = vunpack.c.l.bf16 %v2600_v50  ;;  %v3622_v7 = vsub.s32 1, %v3487_v16  ;;  %v2975_v16 = vld [vmem:[%s3997_s21 + $0x20] sm:$0xff]  }
 0x18c   :  { %v2442_v56 = vunpack.c.h.bf16 %v2592_v51  ;;  %v2441_v60 = vunpack.c.l.bf16 %v2592_v51 }
 0x18d   :  { %2658 = vmatprep.subr.mxu1 %v2474_v55 }
 0x18e   :  { %824 = vmatpush2.bf16.msra.mxu0 %v2884_v8 }
 0x18f   :  { %825 = vmatprep.subr.bf16.mxu0 %v2889_v9 }
 0x192   :  { %826 = vmatpush2.bf16.msra.mxu0 %v2887_v10 }
 0x193   :  { %827 = vmatprep.subr.bf16.mxu0 %v2892_v11 }
 0x196   :  { %828 = vmatpush2.bf16.msra.mxu0 %v2890_v12 }
 0x197   :  { %829 = vmatprep.subr.bf16.mxu0 %v2895_v13 }
 0x19a   :  { %830 = vmatpush2.bf16.msra.mxu0 %v2893_v14 }
 0x19b   :  { %831 = vmatprep.subr.bf16.mxu0 %v2898_v15 }
 0x19e   :  { %832 = vmatpush2.bf16.msra.mxu0 %v2896_v17 }
 0x19f   :  { %833 = vmatprep.subr.bf16.mxu0 %v2901_v44 }
 0x1a2   :  { %834 = vmatpush2.bf16.msra.mxu0 %v2899_v45  ;;  %v2593_v45 = vld [vmem:[%s3983_s7 + $0x40] sm:$0xff]  }
 0x1a3   :  { %835 = vmatprep.subr.bf16.mxu0 %v2904_v46  ;;  %v2412_v46 = vld [vmem:[%s3983_s7] sm:$0xff]   ;;  %v2445_v51 = vunpack.c.l.bf16 %v2593_v45 }
 0x1a4   :  { %v2414_v50 = vunpack.c.h.bf16 %v2412_v46  ;;  %v2413_v53 = vunpack.c.l.bf16 %v2412_v46 }
 0x1a6   :  { %836 = vmatpush2.bf16.msra.mxu0 %v2902_v47 }
 0x1a7   :  { %837 = vmatprep.subr.bf16.mxu0 %v2907_v48 }
 0x1aa   :  { %838 = vmatpush2.bf16.msra.mxu0 %v2905_v49  ;;  %v2446_v49 = vunpack.c.h.bf16 %v2593_v45 }
 0x23c   :  { %v2655_v18 = vpop.f32.mrf.mxu1 }
 0x23e   :  { %v2656_v19 = vpop.f32.mrf.mxu1 }
 0x23f   :  { %v2657_v20 = vadd.f32 %v2656_v19, %v2655_v18 }
 0x241   :  { %v448_v21 = vmul.f32 0.125, %v2657_v20 }
 0x243   :  { %v449_v22 = vmul.f32 %v448_v21, %v448_v21 }
 0x245   :  { %v451_v23 = vrot.slane %v449_v22, 7 }
 0x247   :  { %v453_v24 = vsub.f32 %v448_v21, %v451_v23 }
 0x249   :  { %v454_v25 = vmax.f32 %v453_v24, 0.0  ;;  %v2589_v24 = vld [vmem:[%s3983_s7 + $0x20] sm:$0xff]  }
 0x24b   :  { %v456_v26 = vadd.f32 1e-05, %v454_v25  ;;  %v2430_v25 = vunpack.c.h.bf16 %v2589_v24 }
 0x24d   :  { %2980 = vrsqrt.f32 %v456_v26  ;;  %v2429_v26 = vunpack.c.l.bf16 %v2589_v24 }
 0x25a   :  { %v2981_v31 = vpop.eup %2980 }
 0x25b   :  { %v465_v32 = vrot.slane %v2981_v31, %v3574_v30  ;;  %v2426_v31 = vunpack.c.h.bf16 %v2588_v29 }
 0x25d   :  { %v466_v33 = vcombine.high %v465_v32, %v465_v32  ;;  %v2457_v32 = vunpack.c.l.bf16 %v2596_v27 }
 0x25f   :  { %v473_v35 = vrot.slane %v466_v33, %v3574_v30  ;;  %v2425_v33 = vunpack.c.l.bf16 %v2588_v29 }
 0x261   :  { %v475_v36 = vmul.f32 %v473_v35, %v455_v34  ;;  %v2595_v34 = vld [vmem:[%s3983_s7 + $0x50] sm:$0xff]  }
 0x262   :  { %v2454_v35 = vunpack.c.h.bf16 %v2595_v34 }
 0x263   :  { %v477_v39 = vmul.f32 %v475_v36, %v448_v21  ;;  %v489_v42 = vrot.slane %v475_v36, %v3579_v38  ;;  %v2587_v36 = vld [vmem:[%s3983_s7 + $0x10] sm:$0xff]  }
 0x265   :  { %v478_v40 = vsub.f32 %v476_v37, %v477_v39  ;;  %v2422_v37 = vunpack.c.h.bf16 %v2587_v36  ;;  %v2453_v39 = vunpack.c.l.bf16 %v2595_v34 }
 0x267   :  { %v483_v41 = vrot.slane %v478_v40, %v3579_v38  ;;  %v2421_v40 = vunpack.c.l.bf16 %v2587_v36 }
 0x269   :  { %v491_v43 = vsel %vm219_vm3, %v483_v41, %v489_v42  ;;  %v2594_v41 = vld [vmem:[%s3983_s7 + $0x48] sm:$0xff]  }
 0x26a   :  { %2255 = vmatmul.mubr.msk.f32.vlgmr.msra.gmra.mxu1 %vm516_vm4, %v491_v43  ;;  %v2450_v42 = vunpack.c.h.bf16 %v2594_v41  ;;  %v2586_v43 = vld [vmem:[%s3983_s7 + $0x8] sm:$0xff]   ;;  %v2449_v44 = vunpack.c.l.bf16 %v2594_v41 }
 0x26b   :  { %2659 = vmatpush3.msra.mxu1 %v2442_v56  ;;  %v2418_v47 = vunpack.c.h.bf16 %v2586_v43  ;;  %v2417_v48 = vunpack.c.l.bf16 %v2586_v43 }
 0x26c   :  { %2660 = vmatprep.subr.mxu1 %v2473_v57 }
 0x26d   :  { %2661 = vmatpush3.msra.mxu1 %v2441_v60 }
 0x26e   :  { %2662 = vmatprep.subr.mxu1 %v2470_v61 }
 0x26f   :  { %2663 = vmatpush3.msra.mxu1 %v2438_v62 }
 0x270   :  { %2664 = vmatprep.subr.mxu1 %v2469_v0 }
 0x271   :  { %2665 = vmatpush3.msra.mxu1 %v2437_v2 }
 0x272   :  { %2666 = vmatprep.subr.mxu1 %v2466_v3 }
 0x273   :  { %2667 = vmatpush3.msra.mxu1 %v2434_v4 }
 0x274   :  { %2668 = vmatprep.subr.mxu1 %v2465_v5 }
 0x275   :  { %2669 = vmatpush3.msra.mxu1 %v2433_v6 }
 0x32a   :  { %v586_v8 = vpop.f32.mrf.mxu1 }
 0x32b   :  { %v594_v9 = vrot.slane %v586_v8, %v3579_v38  ;;  %v604_v12 = vrot.slane %v586_v8, %v3622_v7 }
 0x32c   :  { %v588_v10 = vpop.f32.mrf.mxu1 }
 0x32d   :  { %v599_v11 = vmul.f32 %v594_v9, %v3473_v54  ;;  %v598_v13 = vrot.slane %v588_v10, %v3579_v38  ;;  %v608_v17 = vrot.slane %v588_v10, %v3622_v7  ;;  %v2597_v54 = vld [vmem:[%s3983_s7 + $0x60] sm:$0xff]  }
 0x32e   :  { %v2462_v23 = vunpack.c.h.bf16 %v2597_v54 }
 0x32f   :  { %v609_v14 = vadd.f32 %v604_v12, %v599_v11  ;;  %v600_v15 = vmul.f32 %v598_v13, %v3479_v58  ;;  %v2461_v58 = vunpack.c.l.bf16 %v2597_v54 }
 0x330   :  { %2670 = vmatprep.subr.mxu1 %v2462_v23 }
 0x331   :  { %v610_v18 = vadd.f32 %v608_v17, %v600_v15  ;;  %v611_v19 = vmax.f32 %v609_v14, 0.0  ;;  %2671 = vmatpush3.msra.mxu1 %v2430_v25 }
 0x332   :  { %2672 = vmatprep.subr.mxu1 %v2461_v58 }
 0x333   :  { %v612_v20 = vmax.f32 %v610_v18, 0.0  ;;  %v613_v22 = vpack.c.bf16 %v611_v19, %v611_v19  ;;  %2673 = vmatpush3.msra.mxu1 %v2429_v26 }
 0x334   :  { %2674 = vmatprep.subr.mxu1 %v2458_v28  ;;  %v1061_v28 = vld [vmem:[#allocation9 + $0x18] sm:$0xff] }
 0x335   :  { %v614_v21 = vpack.c.bf16 %v612_v20, %v612_v20  ;;  %2675 = vmatpush3.msra.mxu1 %v2426_v31  ;;  %v1069_v29 = vunpack.c.h.bf16 %v1061_v28  ;;  %v1068_v31 = vunpack.c.l.bf16 %v1061_v28  ;;  %v2946_v28 = vld [vmem:[%s3987_s11 + $0xb4] ss:$8 sps:$4 sm:$0xff]  }
 0x336   :  { %2676 = vmatprep.subr.mxu1 %v2457_v32  ;;  %v1060_v32 = vld [vmem:[#allocation9 + $0x10] sm:$0xff] }
 0x337   :  { %839 = vmatprep.mubr.bf16.mxu0 %v614_v21  ;;  %2677 = vmatpush3.msra.mxu1 %v2425_v33  ;;  %v1067_v33 = vunpack.c.h.bf16 %v1060_v32  ;;  %v1066_v34 = vunpack.c.l.bf16 %v1060_v32  ;;  %v2947_v32 = vld [vmem:[%s3987_s11 + $0xa0] ss:$8 sps:$4 sm:$0xff]  }
 0x338   :  { %840 = vmatmul.mubr.bf16.vlgmr.msra.gmra.mxu0 %v613_v22  ;;  %2678 = vmatprep.subr.mxu1 %v2454_v35  ;;  %v1059_v35 = vld [vmem:[#allocation9 + $0x8] sm:$0xff] }
 0x339   :  { %2679 = vmatpush3.msra.mxu1 %v2422_v37  ;;  %v1065_v36 = vunpack.c.h.bf16 %v1059_v35  ;;  %v1064_v37 = vunpack.c.l.bf16 %v1059_v35  ;;  %v2955_v35 = vld [vmem:[%s3987_s11 + $0x84] ss:$8 sps:$4 sm:$0xff]  }
 0x33a   :  { %2680 = vmatprep.subr.mxu1 %v2453_v39  ;;  %v1058_v39 = vld [vmem:[#allocation9] sm:$0xff] }
 0x33b   :  { %2681 = vmatpush3.msra.mxu1 %v2421_v40  ;;  %v1063_v40 = vunpack.c.h.bf16 %v1058_v39  ;;  %v1062_v41 = vunpack.c.l.bf16 %v1058_v39  ;;  %v2607_v39 = vld [vmem:[%s3988_s12 + $0x38] sm:$0xff]  }
 0x33c   :  { %2682 = vmatprep.subr.mxu1 %v2450_v42  ;;  %v2910_v42 = vld [vmem:[%s3987_s11 + $0x74] ss:$8 sps:$4 sm:$0xff]  }
 0x33d   :  { %2683 = vmatpush3.msra.mxu1 %v2418_v47 }
 0x33e   :  { %2684 = vmatprep.subr.mxu1 %v2449_v44 }
 0x33f   :  { %2685 = vmatpush3.msra.mxu1 %v2417_v48 }
 0x340   :  { %2686 = vmatprep.subr.mxu1 %v2446_v49 }
 0x341   :  { %2687 = vmatpush3.msra.mxu1 %v2414_v50 }
 0x342   :  { %2688 = vmatprep.subr.mxu1 %v2445_v51 }
 0x343   :  { %2689 = vmatpush3.msra.mxu1 %v2413_v53 }
 0x344   :  { %1098 = vmatprep.subr.mxu1 %v1069_v29  ;;  %v2944_v29 = vld [vmem:[%s3987_s11 + $0xb0] ss:$8 sps:$4 sm:$0xff]  }
 0x3f8   :  { %v3660_v55 = vpop.f32.mrf.mxu0 }
 0x3f9   :  { %v848_v56 = vsel %vm279_vm2, %v3660_v55, 0.0  ;;  %v862_v57 = vmul.f32 %v3660_v55, %v3660_v55 }
 0x3fa   :  { %v849_v59 = vrot.slane %v848_v56, 4  ;;  %v3666_v60 = vpop.f32.mrf.mxu0 }
 0x3fb   :  { %v864_v61 = vsel %vm279_vm2, %v862_v57, 0.0  ;;  %v855_v62 = vsel %vm279_vm2, %v3666_v60, 0.0  ;;  %v863_v63 = vmul.f32 %v3666_v60, %v3666_v60 }
 0x3fc   :  { %v850_v0 = vadd.f32 %v849_v59, %v848_v56  ;;  %v865_v1 = vrot.slane %v864_v61, 4  ;;  %v856_v2 = vrot.slane %v855_v62, 4  ;;  %v845_v3 = vpop.f32.mrf.mxu0  ;;  %v1021_v59 = vld [vmem:[#allocation10] sm:$0x1] }
 0x3fd   :  { %v871_v4 = vsel %vm279_vm2, %v863_v63, 0.0  ;;  %v1042_v63 = vld [vmem:[#allocation12] sm:$0x1] }
 0x3fe   :  { %v851_v5 = vrot.slane %v850_v0, 2  ;;  %v866_v6 = vadd.f32 %v865_v1, %v864_v61  ;;  %v857_v8 = vadd.f32 %v856_v2, %v855_v62  ;;  %v872_v9 = vrot.slane %v871_v4, 4  ;;  %v846_v10 = vpop.f32.mrf.mxu0 }
 0x3ff   :  { %v2914_v10 = vld [vmem:[%s3987_s11 + $0x50] ss:$8 sps:$4 sm:$0xff]  }
 0x400   :  { %v867_v11 = vrot.slane %v866_v6, 2  ;;  %v858_v12 = vrot.slane %v857_v8, 2  ;;  %v873_v13 = vadd.f32 %v872_v9, %v871_v4  ;;  %v852_v14 = vadd.f32 %v851_v5, %v850_v0  ;;  %v2908_v4 = vld [vmem:[%s3987_s11 + $0x70] ss:$8 sps:$4 sm:$0xff]   ;;  %v2913_v5 = vld [vmem:[%s3987_s11 + $0x64] ss:$8 sps:$4 sm:$0xff]  }
 0x401   :  { %v2916_v9 = vld [vmem:[%s3987_s11 + $0x54] ss:$8 sps:$4 sm:$0xff]  }
 0x402   :  { %v868_v15 = vadd.f32 %v867_v11, %v866_v6  ;;  %v859_v17 = vadd.f32 %v858_v12, %v857_v8  ;;  %v874_v18 = vrot.slane %v873_v13, 2  ;;  %v853_v22 = vrot.slane %v852_v14, 1  ;;  %v2911_v8 = vld [vmem:[%s3987_s11 + $0x60] ss:$8 sps:$4 sm:$0xff]   ;;  %v2919_v11 = vld [vmem:[%s3987_s11 + $0x44] ss:$8 sps:$4 sm:$0xff]  }
 0x403   :  { %v2917_v12 = vld [vmem:[%s3987_s11 + $0x40] ss:$8 sps:$4 sm:$0xff]  }
 0x404   :  { %v860_v19 = vrot.slane %v859_v17, 1  ;;  %v875_v20 = vadd.f32 %v874_v18, %v873_v13  ;;  %v869_v21 = vrot.slane %v868_v15, 1  ;;  %v854_v58 = vadd.f32 %v853_v22, %v852_v14  ;;  %v2922_v13 = vld [vmem:[%s3987_s11 + $0x34] ss:$8 sps:$4 sm:$0xff]   ;;  %v2920_v14 = vld [vmem:[%s3987_s11 + $0x30] ss:$8 sps:$4 sm:$0xff]  }
 0x405   :  { %v2928_v18 = vld [vmem:[%s3987_s11 + $0x14] ss:$8 sps:$4 sm:$0xff]  }
 0x406   :  { %v876_v54 = vrot.slane %v875_v20, 1  ;;  %v870_v23 = vadd.f32 %v869_v21, %v868_v15  ;;  %v861_v24 = vadd.f32 %v860_v19, %v859_v17  ;;  %v2925_v15 = vld [vmem:[%s3987_s11 + $0x24] ss:$8 sps:$4 sm:$0xff]   ;;  %v2923_v17 = vld [vmem:[%s3987_s11 + $0x20] ss:$8 sps:$4 sm:$0xff]  }
 0x407   :  { %v2926_v19 = vld [vmem:[%s3987_s11 + $0x10] ss:$8 sps:$4 sm:$0xff]   ;;  %v2929_v21 = vld [vmem:[%s3987_s11] ss:$8 sps:$4 sm:$0xff]   ;;  %v2934_v22 = vld [vmem:[%s3987_s11 + $0xf4] ss:$8 sps:$4 sm:$0xff]  }
 0x408   :  { %v877_v25 = vadd.f32 %v876_v54, %v875_v20  ;;  %v878_v27 = vsel %vm219_vm3, %v870_v23, %v854_v58  ;;  %v2931_v20 = vld [vmem:[%s3987_s11 + $0x4] ss:$8 sps:$4 sm:$0xff]   ;;  %v2932_v54 = vld [vmem:[%s3987_s11 + $0xf0] ss:$8 sps:$4 sm:$0xff]  }
 0x409   :  { %v2937_v23 = vld [vmem:[%s3987_s11 + $0xe4] ss:$8 sps:$4 sm:$0xff]   ;;  %v2938_v58 = vld [vmem:[%s3987_s11 + $0xd0] ss:$8 sps:$4 sm:$0xff]  }
 0x40a   :  { %v879_v26 = vsel %vm219_vm3, %v877_v25, %v861_v24  ;;  %v2935_v24 = vld [vmem:[%s3987_s11 + $0xe0] ss:$8 sps:$4 sm:$0xff]   ;;  %v2940_v25 = vld [vmem:[%s3987_s11 + $0xd4] ss:$8 sps:$4 sm:$0xff]  }
 0x40b   :  { %1008 = vmatprep.mubr.f32.mxu1 %v879_v26  ;;  %v2943_v26 = vld [vmem:[%s3987_s11 + $0xc4] ss:$8 sps:$4 sm:$0xff]  }
 0x40c   :  { %1009 = vmatmul.mubr.f32.vlgmr.msra.gmra.mxu1 %v878_v27  ;;  %v2941_v27 = vld [vmem:[%s3987_s11 + $0xc0] ss:$8 sps:$4 sm:$0xff]  }
 0x40d   :  { %1138 = vmatprep.mubr.f32.mxu1 %v3261_v52  ;;  %1099 = vmatpush1.msra.mxu1 %v1068_v31  ;;  %v2949_v31 = vld [vmem:[%s3987_s11 + $0xa4] ss:$8 sps:$4 sm:$0xff]  }
 0x40e   :  { %1100 = vmatprep.subr.mxu1 %v1067_v33  ;;  %v2952_v33 = vld [vmem:[%s3987_s11 + $0x94] ss:$8 sps:$4 sm:$0xff]  }
 0x40f   :  { %1101 = vmatpush1.msra.mxu1 %v1066_v34  ;;  %v2950_v34 = vld [vmem:[%s3987_s11 + $0x90] ss:$8 sps:$4 sm:$0xff]  }
 0x410   :  { %1102 = vmatprep.subr.mxu1 %v1065_v36  ;;  %v2953_v36 = vld [vmem:[%s3987_s11 + $0x80] ss:$8 sps:$4 sm:$0xff]  }
 0x411   :  { %1103 = vmatpush1.msra.mxu1 %v1064_v37  ;;  %v2615_v37 = vld [vmem:[%s3988_s12 + $0x78] sm:$0xff]  }
 0x412   :  { %1104 = vmatprep.subr.mxu1 %v1063_v40  ;;  %v2614_v40 = vld [vmem:[%s3988_s12 + $0x70] sm:$0xff]  }
 0x413   :  { %1105 = vmatpush1.msra.mxu1 %v1062_v41  ;;  %v2538_v41 = vunpack.c.h.bf16 %v2615_v37 }
 0x414   :  { %1361 = vmatprep.subr.bf16.mxu1 %v2910_v42  ;;  %v2506_v42 = vunpack.c.h.bf16 %v2607_v39 }
 0x415   :  { %2693 = vmatprep.subr.mxu0 %v2538_v41 }
 0x416   :  { %2694 = vmatpush3.msra.mxu0 %v2506_v42 }
 0x4cc   :  { %v2690_v43 = vpop.f32.mrf.mxu1 }
 0x4ce   :  { %v2691_v44 = vpop.f32.mrf.mxu1 }
 0x4cf   :  { %v2692_v45 = vadd.f32 %v2691_v44, %v2690_v43  ;;  %v2537_v43 = vunpack.c.l.bf16 %v2615_v37  ;;  %v2606_v44 = vld [vmem:[%s3988_s12 + $0x30] sm:$0xff]  }
 0x4d1   :  { %v1014_v46 = vmul.f32 0.083333336, %v2692_v45  ;;  %v2505_v45 = vunpack.c.l.bf16 %v2607_v39  ;;  %2695 = vmatprep.subr.mxu0 %v2537_v43 }
 0x4d3   :  { %v1015_v47 = vmul.f32 %v1014_v46, %v1014_v46  ;;  %2696 = vmatpush3.msra.mxu0 %v2505_v45 }
 0x4d5   :  { %v1017_v48 = vrot.slane %v1015_v47, 7  ;;  %v2502_v47 = vunpack.c.h.bf16 %v2606_v44 }
 0x4d7   :  { %v1019_v49 = vsub.f32 %v1014_v46, %v1017_v48  ;;  %v2613_v48 = vld [vmem:[%s3988_s12 + $0x68] sm:$0xff]  }
 0x4d9   :  { %v1020_v50 = vmax.f32 %v1019_v49, 0.0  ;;  %v2533_v49 = vunpack.c.l.bf16 %v2614_v40 }
 0x4db   :  { %v1022_v51 = vadd.f32 1e-05, %v1020_v50  ;;  %v2605_v50 = vld [vmem:[%s3988_s12 + $0x28] sm:$0xff]  }
 0x4dd   :  { %2982 = vrsqrt.f32 %v1022_v51  ;;  %v2501_v51 = vunpack.c.l.bf16 %v2606_v44 }
 0x4ea   :  { %v2983_v53 = vpop.eup %2982 }
 0x4eb   :  { %v1031_v56 = vrot.slane %v2983_v53, %v3574_v30  ;;  %v2530_v53 = vunpack.c.h.bf16 %v2613_v48 }
 0x4ed   :  { %v1032_v57 = vcombine.high %v1031_v56, %v1031_v56  ;;  %v2498_v56 = vunpack.c.h.bf16 %v2605_v50 }
 0x4ef   :  { %v1039_v61 = vrot.slane %v1032_v57, %v3574_v30  ;;  %v2529_v57 = vunpack.c.l.bf16 %v2613_v48 }
 0x4f1   :  { %v1041_v62 = vmul.f32 %v1039_v61, %v1021_v59  ;;  %v2497_v59 = vunpack.c.l.bf16 %v2605_v50 }
 0x4f3   :  { %v1043_v0 = vmul.f32 %v1041_v62, %v1014_v46  ;;  %v1055_v3 = vrot.slane %v1041_v62, %v3579_v38  ;;  %v2534_v46 = vunpack.c.h.bf16 %v2614_v40 }
 0x4f5   :  { %v1044_v1 = vsub.f32 %v1042_v63, %v1043_v0  ;;  %2697 = vmatprep.subr.mxu0 %v2534_v46 }
 0x4f6   :  { %2698 = vmatpush3.msra.mxu0 %v2502_v47 }
 0x4f7   :  { %v1049_v2 = vrot.slane %v1044_v1, %v3579_v38  ;;  %2699 = vmatprep.subr.mxu0 %v2533_v49 }
 0x4f8   :  { %2700 = vmatpush3.msra.mxu0 %v2501_v51 }
 0x4f9   :  { %v1057_v6 = vsel %vm219_vm3, %v1049_v2, %v1055_v3  ;;  %2701 = vmatprep.subr.mxu0 %v2530_v53 }
 0x4fa   :  { %2288 = vmatmul.mubr.msk.f32.vlgmr.msra.gmra.mxu1 %vm1070_vm5, %v1057_v6  ;;  %2702 = vmatpush3.msra.mxu0 %v2498_v56 }
 0x4fb   :  { %1362 = vmatpush1.bf16.msra.mxu1 %v2908_v4  ;;  %2703 = vmatprep.subr.mxu0 %v2529_v57 }
 0x4fc   :  { %1363 = vmatprep.subr.bf16.mxu1 %v2913_v5  ;;  %2704 = vmatpush3.msra.mxu0 %v2497_v59 }
 0x4ff   :  { %1364 = vmatpush1.bf16.msra.mxu1 %v2911_v8 }
 0x500   :  { %1365 = vmatprep.subr.bf16.mxu1 %v2916_v9 }
 0x503   :  { %1366 = vmatpush1.bf16.msra.mxu1 %v2914_v10 }
 0x504   :  { %1367 = vmatprep.subr.bf16.mxu1 %v2919_v11 }
 0x507   :  { %1368 = vmatpush1.bf16.msra.mxu1 %v2917_v12 }
 0x508   :  { %1369 = vmatprep.subr.bf16.mxu1 %v2922_v13  ;;  %v2604_v13 = vld [vmem:[%s3988_s12 + $0x20] sm:$0xff]  }
 0x50b   :  { %1370 = vmatpush1.bf16.msra.mxu1 %v2920_v14  ;;  %v2494_v14 = vunpack.c.h.bf16 %v2604_v13 }
 0x50c   :  { %1371 = vmatprep.subr.bf16.mxu1 %v2925_v15  ;;  %v2493_v15 = vunpack.c.l.bf16 %v2604_v13 }
 0x50f   :  { %1372 = vmatpush1.bf16.msra.mxu1 %v2923_v17  ;;  %v2611_v17 = vld [vmem:[%s3988_s12 + $0x58] sm:$0xff]  }
 0x510   :  { %1373 = vmatprep.subr.bf16.mxu1 %v2928_v18  ;;  %v2522_v18 = vunpack.c.h.bf16 %v2611_v17 }
 0x513   :  { %1374 = vmatpush1.bf16.msra.mxu1 %v2926_v19  ;;  %v2603_v19 = vld [vmem:[%s3988_s12 + $0x18] sm:$0xff]  }
 0x514   :  { %1375 = vmatprep.subr.bf16.mxu1 %v2931_v20  ;;  %v2490_v20 = vunpack.c.h.bf16 %v2603_v19 }
 0x517   :  { %1376 = vmatpush1.bf16.msra.mxu1 %v2929_v21  ;;  %v2521_v21 = vunpack.c.l.bf16 %v2611_v17 }
 0x518   :  { %1377 = vmatprep.subr.bf16.mxu1 %v2934_v22  ;;  %v2489_v22 = vunpack.c.l.bf16 %v2603_v19 }
 0x51b   :  { %1378 = vmatpush2.bf16.msra.mxu1 %v2932_v54  ;;  %v2610_v54 = vld [vmem:[%s3988_s12 + $0x50] sm:$0xff]  }
 0x51c   :  { %1379 = vmatprep.subr.bf16.mxu1 %v2937_v23  ;;  %v2518_v23 = vunpack.c.h.bf16 %v2610_v54 }
 0x51f   :  { %1380 = vmatpush2.bf16.msra.mxu1 %v2935_v24  ;;  %v2602_v24 = vld [vmem:[%s3988_s12 + $0x10] sm:$0xff]  }
 0x520   :  { %1381 = vmatprep.subr.bf16.mxu1 %v2940_v25  ;;  %v2486_v25 = vunpack.c.h.bf16 %v2602_v24 }
 0x523   :  { %1382 = vmatpush2.bf16.msra.mxu1 %v2938_v58  ;;  %v2517_v58 = vunpack.c.l.bf16 %v2610_v54 }
 0x524   :  { %1383 = vmatprep.subr.bf16.mxu1 %v2943_v26  ;;  %v2485_v26 = vunpack.c.l.bf16 %v2602_v24 }
 0x527   :  { %1384 = vmatpush2.bf16.msra.mxu1 %v2941_v27  ;;  %v2609_v27 = vld [vmem:[%s3988_s12 + $0x48] sm:$0xff]  }
 0x528   :  { %1385 = vmatprep.subr.bf16.mxu1 %v2946_v28  ;;  %v2514_v28 = vunpack.c.h.bf16 %v2609_v27 }
 0x52b   :  { %1386 = vmatpush2.bf16.msra.mxu1 %v2944_v29  ;;  %v2601_v29 = vld [vmem:[%s3988_s12 + $0x8] sm:$0xff]  }
 0x52c   :  { %1387 = vmatprep.subr.bf16.mxu1 %v2949_v31  ;;  %v2513_v31 = vunpack.c.l.bf16 %v2609_v27 }
 0x52f   :  { %1388 = vmatpush2.bf16.msra.mxu1 %v2947_v32  ;;  %v2608_v32 = vld [vmem:[%s3988_s12 + $0x40] sm:$0xff]  }
 0x530   :  { %1389 = vmatprep.subr.bf16.mxu1 %v2952_v33  ;;  %v2476_v33 = vld [vmem:[%s3988_s12] sm:$0xff]   ;;  %v2509_v39 = vunpack.c.l.bf16 %v2608_v32 }
 0x531   :  { %v2478_v37 = vunpack.c.h.bf16 %v2476_v33  ;;  %v2477_v40 = vunpack.c.l.bf16 %v2476_v33 }
 0x533   :  { %1390 = vmatpush2.bf16.msra.mxu1 %v2950_v34  ;;  %v2482_v34 = vunpack.c.h.bf16 %v2601_v29 }
 0x534   :  { %1391 = vmatprep.subr.bf16.mxu1 %v2955_v35  ;;  %v2481_v35 = vunpack.c.l.bf16 %v2601_v29 }
 0x537   :  { %1392 = vmatpush2.bf16.msra.mxu1 %v2953_v36  ;;  %v2510_v36 = vunpack.c.h.bf16 %v2608_v32 }
 0x538   :  { %2778 = vmatprep.subr.mxu1 %v3261_v52 }
 0x5ba   :  { %v1140_v61 = vpop.f32.mrf.mxu1 }
 0x5bb   :  { %v1148_v62 = vrot.slane %v1140_v61, %v3579_v38  ;;  %v1158_v1 = vrot.slane %v1140_v61, %v3622_v7 }
 0x5bc   :  { %v1142_v63 = vpop.f32.mrf.mxu1 }
 0x5bd   :  { %v1153_v0 = vmul.f32 %v1148_v62, %v3660_v55  ;;  %v1152_v2 = vrot.slane %v1142_v63, %v3579_v38  ;;  %v1162_v5 = vrot.slane %v1142_v63, %v3622_v7  ;;  %v2612_v55 = vld [vmem:[%s3988_s12 + $0x60] sm:$0xff]  }
 0x5be   :  { %v2526_v12 = vunpack.c.h.bf16 %v2612_v55 }
 0x5bf   :  { %v1163_v3 = vadd.f32 %v1158_v1, %v1153_v0  ;;  %v1154_v4 = vmul.f32 %v1152_v2, %v3666_v60  ;;  %v2525_v60 = vunpack.c.l.bf16 %v2612_v55 }
 0x5c0   :  { %2705 = vmatprep.subr.mxu0 %v2526_v12 }
 0x5c1   :  { %v1164_v6 = vadd.f32 %v1162_v5, %v1154_v4  ;;  %v1165_v8 = vmax.f32 %v1163_v3, 0.0  ;;  %2706 = vmatpush3.msra.mxu0 %v2494_v14 }
 0x5c2   :  { %2707 = vmatprep.subr.mxu0 %v2525_v60 }
 0x5c3   :  { %v1166_v9 = vmax.f32 %v1164_v6, 0.0  ;;  %v1167_v11 = vpack.c.bf16 %v1165_v8, %v1165_v8  ;;  %2708 = vmatpush3.msra.mxu0 %v2493_v15 }
 0x5c4   :  { %2709 = vmatprep.subr.mxu0 %v2522_v18  ;;  %v1613_v18 = vld [vmem:[%s3989_s13 + $0x8] sm:$0xff] }
 0x5c5   :  { %v1168_v10 = vpack.c.bf16 %v1166_v9, %v1166_v9  ;;  %2710 = vmatpush3.msra.mxu0 %v2490_v20  ;;  %v1617_v19 = vunpack.c.h.bf16 %v1613_v18  ;;  %v1616_v20 = vunpack.c.l.bf16 %v1613_v18 }
 0x5c6   :  { %2711 = vmatprep.subr.mxu0 %v2521_v21  ;;  %v1612_v21 = vld [vmem:[%s3989_s13] sm:$0xff] }
 0x5c7   :  { %1393 = vmatprep.mubr.bf16.mxu1 %v1168_v10  ;;  %2712 = vmatpush3.msra.mxu0 %v2489_v22  ;;  %v1615_v22 = vunpack.c.h.bf16 %v1612_v21  ;;  %v1614_v54 = vunpack.c.l.bf16 %v1612_v21 }
 0x5c8   :  { %1394 = vmatmul.mubr.bf16.vlgmr.msra.gmra.mxu1 %v1167_v11  ;;  %2713 = vmatprep.subr.mxu0 %v2518_v23  ;;  %v2956_v23 = vld [vmem:[#allocation16 + $0x78] sm:$0xff]  }
 0x5c9   :  { %2714 = vmatpush3.msra.mxu0 %v2486_v25  ;;  %2810 = vmatprep.mubr.msk.f32.mxu1 %vm3263_vm7, %v3261_v52 }
 0x5ca   :  { %2715 = vmatprep.subr.mxu0 %v2517_v58 }
 0x5cb   :  { %2716 = vmatpush3.msra.mxu0 %v2485_v26 }
 0x5cc   :  { %2717 = vmatprep.subr.mxu0 %v2514_v28 }
 0x5cd   :  { %2718 = vmatpush3.msra.mxu0 %v2482_v34 }
 0x5ce   :  { %2719 = vmatprep.subr.mxu0 %v2513_v31 }
 0x5cf   :  { %2720 = vmatpush3.msra.mxu0 %v2481_v35 }
 0x5d0   :  { %2721 = vmatprep.subr.mxu0 %v2510_v36  ;;  %v1575_v36 = vld [vmem:[#allocation13] sm:$0x1] }
 0x5d1   :  { %2722 = vmatpush3.msra.mxu0 %v2478_v37 }
 0x5d2   :  { %2723 = vmatprep.subr.mxu0 %v2509_v39 }
 0x5d3   :  { %2724 = vmatpush3.msra.mxu0 %v2477_v40  ;;  %v1596_v40 = vld [vmem:[#allocation15] sm:$0x1] }
 0x5d4   :  { %1650 = vmatprep.subr.mxu0 %v1617_v19 }
 0x688   :  { %v3836_v41 = vpop.f32.mrf.mxu1 }
 0x689   :  { %v1402_v42 = vsel %vm279_vm2, %v3836_v41, 0.0  ;;  %v1416_v43 = vmul.f32 %v3836_v41, %v3836_v41 }
 0x68a   :  { %v1403_v44 = vrot.slane %v1402_v42, 4  ;;  %v3842_v45 = vpop.f32.mrf.mxu1 }
 0x68b   :  { %v1418_v46 = vsel %vm279_vm2, %v1416_v43, 0.0  ;;  %v1409_v47 = vsel %vm279_vm2, %v3842_v45, 0.0  ;;  %v1417_v48 = vmul.f32 %v3842_v45, %v3842_v45 }
 0x68c   :  { %v1404_v49 = vadd.f32 %v1403_v44, %v1402_v42  ;;  %v1419_v50 = vrot.slane %v1418_v46, 4  ;;  %v1410_v51 = vrot.slane %v1409_v47, 4  ;;  %v1399_v53 = vpop.f32.mrf.mxu1 }
 0x68d   :  { %v1425_v56 = vsel %vm279_vm2, %v1417_v48, 0.0  ;;  %v2958_v48 = vld [vmem:[#allocation16 + $0x70] sm:$0xff]   ;;  %v2961_v53 = vld [vmem:[#allocation16 + $0x28] sm:$0xff]  }
 0x68e   :  { %v1405_v57 = vrot.slane %v1404_v49, 2  ;;  %v1420_v59 = vadd.f32 %v1419_v50, %v1418_v46  ;;  %v1411_v61 = vadd.f32 %v1410_v51, %v1409_v47  ;;  %v1426_v62 = vrot.slane %v1425_v56, 4  ;;  %v1400_v63 = vpop.f32.mrf.mxu1  ;;  %v2957_v47 = vld [vmem:[#allocation16 + $0x38] sm:$0xff]   ;;  %v2959_v50 = vld [vmem:[#allocation16 + $0x30] sm:$0xff]   ;;  %v2960_v51 = vld [vmem:[#allocation16 + $0x68] sm:$0xff]  }
 0x68f   :  { %v2967_v63 = vld [vmem:[#allocation16 + $0x10] sm:$0xff]  }
 0x690   :  { %v1421_v0 = vrot.slane %v1420_v59, 2  ;;  %v1412_v1 = vrot.slane %v1411_v61, 2  ;;  %v1427_v2 = vadd.f32 %v1426_v62, %v1425_v56  ;;  %v1406_v3 = vadd.f32 %v1405_v57, %v1404_v49  ;;  %v2962_v56 = vld [vmem:[#allocation16 + $0x60] sm:$0xff]   ;;  %v2966_v62 = vld [vmem:[#allocation16 + $0x50] sm:$0xff]  }
 0x691   :  { %v2963_v57 = vld [vmem:[#allocation16 + $0x20] sm:$0xff]  }
 0x692   :  { %v1422_v4 = vadd.f32 %v1421_v0, %v1420_v59  ;;  %v1413_v5 = vadd.f32 %v1412_v1, %v1411_v61  ;;  %v1428_v6 = vrot.slane %v1427_v2, 2  ;;  %v1407_v11 = vrot.slane %v1406_v3, 1  ;;  %v2964_v59 = vld [vmem:[#allocation16 + $0x58] sm:$0xff]   ;;  %v2968_v0 = vld [vmem:[#allocation16 + $0x48] sm:$0xff]  }
 0x693   :  { %v2965_v61 = vld [vmem:[#allocation16 + $0x18] sm:$0xff]   ;;  %v2969_v1 = vld [vmem:[#allocation16 + $0x8] sm:$0xff]  }
 0x694   :  { %v1414_v8 = vrot.slane %v1413_v5, 1  ;;  %v1429_v9 = vadd.f32 %v1428_v6, %v1427_v2  ;;  %v1423_v10 = vrot.slane %v1422_v4, 1  ;;  %v1408_v60 = vadd.f32 %v1407_v11, %v1406_v3  ;;  %v2970_v2 = vld [vmem:[#allocation16 + $0x40] sm:$0xff]  }
 0x695   :  { %v2971_v3 = vld [vmem:[#allocation16] sm:$0xff]  }
 0x696   :  { %v1430_v55 = vrot.slane %v1429_v9, 1  ;;  %v1424_v12 = vadd.f32 %v1423_v10, %v1422_v4  ;;  %v1415_v13 = vadd.f32 %v1414_v8, %v1413_v5  ;;  %v2622_v4 = vld [vmem:[%s3993_s17 + $0x38] sm:$0xff]   ;;  %v2621_v5 = vld [vmem:[%s3993_s17 + $0x30] sm:$0xff]   ;;  %v2620_v10 = vld [vmem:[%s3993_s17 + $0x28] sm:$0xff]  }
 0x697   :  { %v2570_v6 = vunpack.c.h.bf16 %v2622_v4  ;;  %v2569_v8 = vunpack.c.l.bf16 %v2622_v4  ;;  %v2565_v11 = vunpack.c.l.bf16 %v2621_v5  ;;  %v2047_v4 = vld [vmem:[%s3994_s18] sm:$0xf] }
 0x698   :  { %v1431_v14 = vadd.f32 %v1430_v55, %v1429_v9  ;;  %v1432_v17 = vsel %vm219_vm3, %v1424_v12, %v1408_v60  ;;  %v2566_v9 = vunpack.c.h.bf16 %v2621_v5  ;;  %v2562_v55 = vunpack.c.h.bf16 %v2620_v10 }
 0x699   :  { %2779 = vmatpush3.msra.mxu1 %v2570_v6  ;;  %v2048_v5 = vunpack.c.l.bf16 %v2047_v4 }
 0x69a   :  { %v1433_v15 = vsel %vm219_vm3, %v1431_v14, %v1415_v13  ;;  %2780 = vmatprep.subr.mxu1 %v3261_v52 }
 0x69b   :  { %1562 = vmatprep.mubr.f32.mxu0 %v1433_v15  ;;  %2781 = vmatpush3.msra.mxu1 %v2569_v8 }
 0x69c   :  { %1563 = vmatmul.mubr.f32.vlgmr.msra.gmra.mxu0 %v1432_v17  ;;  %2782 = vmatprep.subr.mxu1 %v3261_v52 }
 0x69d   :  { %1686 = vmatprep.mubr.f32.mxu0 %v3261_v52  ;;  %1651 = vmatpush1.msra.mxu0 %v1616_v20 }
 0x69e   :  { %1652 = vmatprep.subr.mxu0 %v1615_v22  ;;  %2783 = vmatpush3.msra.mxu1 %v2566_v9 }
 0x69f   :  { %1653 = vmatpush1.msra.mxu0 %v1614_v54  ;;  %2784 = vmatprep.subr.mxu1 %v3261_v52 }
 0x6a0   :  { %2728 = vmatprep.subr.bf16.mxu0 %v2956_v23  ;;  %2785 = vmatpush3.msra.mxu1 %v2565_v11 }
 0x6a1   :  { %2786 = vmatprep.subr.mxu1 %v3261_v52 }
 0x6a2   :  { %2787 = vmatpush3.msra.mxu1 %v2562_v55 }
 0x6a3   :  { %2788 = vmatprep.subr.mxu1 %v3261_v52 }
 0x75c   :  { %v2725_v24 = vpop.f32.mrf.mxu0 }
 0x75e   :  { %v2726_v25 = vpop.f32.mrf.mxu0 }
 0x75f   :  { %v2727_v58 = vadd.f32 %v2726_v25, %v2725_v24  ;;  %v2561_v25 = vunpack.c.l.bf16 %v2620_v10 }
 0x761   :  { %v1568_v26 = vmul.f32 0.05, %v2727_v58  ;;  %2789 = vmatpush3.msra.mxu1 %v2561_v25 }
 0x762   :  { %2790 = vmatprep.subr.mxu1 %v3261_v52 }
 0x763   :  { %v1569_v27 = vmul.f32 %v1568_v26, %v1568_v26 }
 0x765   :  { %v1571_v28 = vrot.slane %v1569_v27, 7 }
 0x767   :  { %v1573_v29 = vsub.f32 %v1568_v26, %v1571_v28 }
 0x769   :  { %v1574_v31 = vmax.f32 %v1573_v29, 0.0  ;;  %v2617_v29 = vld [vmem:[%s3993_s17 + $0x10] sm:$0xff]  }
 0x76b   :  { %v1576_v32 = vadd.f32 1e-05, %v1574_v31  ;;  %v2550_v31 = vunpack.c.h.bf16 %v2617_v29 }
 0x76d   :  { %2984 = vrsqrt.f32 %v1576_v32  ;;  %v2549_v32 = vunpack.c.l.bf16 %v2617_v29 }
 0x77a   :  { %v2985_v33 = vpop.eup %2984 }
 0x77b   :  { %v1585_v34 = vrot.slane %v2985_v33, %v3574_v30  ;;  %v2616_v33 = vld [vmem:[%s3993_s17 + $0x8] sm:$0xff]  }
 0x77d   :  { %v1586_v35 = vcombine.high %v1585_v34, %v1585_v34  ;;  %v2546_v34 = vunpack.c.h.bf16 %v2616_v33 }
 0x77f   :  { %v1593_v37 = vrot.slane %v1586_v35, %v3574_v30  ;;  %v2545_v35 = vunpack.c.l.bf16 %v2616_v33 }
 0x781   :  { %v1595_v39 = vmul.f32 %v1593_v37, %v1575_v36  ;;  %v2540_v36 = vld [vmem:[%s3993_s17] sm:$0xff]  }
 0x782   :  { %v2542_v37 = vunpack.c.h.bf16 %v2540_v36 }
 0x783   :  { %v1597_v42 = vmul.f32 %v1595_v39, %v1568_v26  ;;  %v1609_v46 = vrot.slane %v1595_v39, %v3579_v38  ;;  %v2618_v26 = vld [vmem:[%s3993_s17 + $0x18] sm:$0xff]   ;;  %v2541_v39 = vunpack.c.l.bf16 %v2540_v36 }
 0x784   :  { %v2554_v27 = vunpack.c.h.bf16 %v2618_v26  ;;  %v2553_v28 = vunpack.c.l.bf16 %v2618_v26  ;;  %v2978_v26 = vld [vmem:[%s3997_s21 + $0x8] sm:$0xff]  }
 0x785   :  { %v1598_v43 = vsub.f32 %v1596_v40, %v1597_v42 }
 0x787   :  { %v1603_v44 = vrot.slane %v1598_v43, %v3579_v38 }
 0x789   :  { %v1611_v49 = vsel %vm219_vm3, %v1603_v44, %v1609_v46 }
 0x78a   :  { %2321 = vmatmul.mubr.msk.f32.vlgmr.msra.gmra.mxu0 %vm1618_vm6, %v1611_v49 }
 0x78b   :  { %2729 = vmatpush3.bf16.msra.mxu0 %v2957_v47 }
 0x78c   :  { %2730 = vmatprep.subr.bf16.mxu0 %v2958_v48 }
 0x78f   :  { %2731 = vmatpush3.bf16.msra.mxu0 %v2959_v50 }
 0x790   :  { %2732 = vmatprep.subr.bf16.mxu0 %v2960_v51 }
 0x793   :  { %2733 = vmatpush3.bf16.msra.mxu0 %v2961_v53 }
 0x794   :  { %2734 = vmatprep.subr.bf16.mxu0 %v2962_v56 }
 0x797   :  { %2735 = vmatpush3.bf16.msra.mxu0 %v2963_v57 }
 0x798   :  { %2736 = vmatprep.subr.bf16.mxu0 %v2964_v59 }
 0x79b   :  { %2737 = vmatpush3.bf16.msra.mxu0 %v2965_v61 }
 0x79c   :  { %2738 = vmatprep.subr.bf16.mxu0 %v2966_v62 }
 0x79f   :  { %2739 = vmatpush3.bf16.msra.mxu0 %v2967_v63 }
 0x7a0   :  { %2740 = vmatprep.subr.bf16.mxu0 %v2968_v0 }
 0x7a3   :  { %2741 = vmatpush3.bf16.msra.mxu0 %v2969_v1 }
 0x7a4   :  { %2742 = vmatprep.subr.bf16.mxu0 %v2970_v2 }
 0x7a7   :  { %2743 = vmatpush3.bf16.msra.mxu0 %v2971_v3 }
 0x7a8   :  { %2813 = vmatprep.subr.mxu0 %v3261_v52 }
 0x84a   :  { %v1688_v12 = vpop.f32.mrf.mxu0 }
 0x84b   :  { %v1696_v13 = vrot.slane %v1688_v12, %v3579_v38  ;;  %v1706_v15 = vrot.slane %v1688_v12, %v3622_v7 }
 0x84c   :  { %v1690_v14 = vpop.f32.mrf.mxu0 }
 0x84d   :  { %v1701_v60 = vmul.f32 %v1696_v13, %v3836_v41  ;;  %v1700_v17 = vrot.slane %v1690_v14, %v3579_v38  ;;  %v1710_v20 = vrot.slane %v1690_v14, %v3622_v7  ;;  %v2619_v41 = vld [vmem:[%s3993_s17 + $0x20] sm:$0xff]  }
 0x84e   :  { %v2558_v58 = vunpack.c.h.bf16 %v2619_v41 }
 0x84f   :  { %v1711_v18 = vadd.f32 %v1706_v15, %v1701_v60  ;;  %v1702_v19 = vmul.f32 %v1700_v17, %v3842_v45  ;;  %v2557_v45 = vunpack.c.l.bf16 %v2619_v41  ;;  %v2010_v17 = vld [vmem:[#allocation18] sm:$0x1]  ;;  %v2974_v41 = vld [vmem:[%s3997_s21 + $0x28] sm:$0xff]  }
 0x850   :  { %2791 = vmatpush3.msra.mxu1 %v2558_v58  ;;  %v2976_v58 = vld [vmem:[%s3997_s21 + $0x18] sm:$0xff]  }
 0x851   :  { %v1712_v21 = vadd.f32 %v1710_v20, %v1702_v19  ;;  %v1713_v22 = vmax.f32 %v1711_v18, 0.0  ;;  %2792 = vmatprep.subr.mxu1 %v3261_v52  ;;  %v2031_v20 = vld [vmem:[#allocation19] sm:$0x1] }
 0x852   :  { %2793 = vmatpush3.msra.mxu1 %v2557_v45  ;;  %v2977_v45 = vld [vmem:[%s3997_s21 + $0x10] sm:$0xff]  }
 0x853   :  { %v1714_v54 = vmax.f32 %v1712_v21, 0.0  ;;  %v1715_v24 = vpack.c.bf16 %v1713_v22, %v1713_v22  ;;  %2794 = vmatprep.subr.mxu1 %v3261_v52 }
 0x854   :  { %2795 = vmatpush3.msra.mxu1 %v2554_v27  ;;  %v2979_v27 = vld [vmem:[%s3997_s21] sm:$0xff]  }
 0x855   :  { %v1716_v23 = vpack.c.bf16 %v1714_v54, %v1714_v54  ;;  %2796 = vmatprep.subr.mxu1 %v3261_v52 }
 0x856   :  { %2797 = vmatpush3.msra.mxu1 %v2553_v28 }
 0x857   :  { %1877 = vmatprep.mubr.bf16.mxu0 %v1716_v23  ;;  %2798 = vmatprep.subr.mxu1 %v3261_v52 }
 0x858   :  { %1878 = vmatmul.mubr.bf16.vlgmr.msra.gmra.mxu0 %v1715_v24  ;;  %2799 = vmatpush3.msra.mxu1 %v2550_v31  ;;  %v2972_v24 = vld [vmem:[%s3997_s21 + $0x38] sm:$0xff]  }
 0x859   :  { %2800 = vmatprep.subr.mxu1 %v3261_v52  ;;  %2815 = vmatprep.mubr.msk.f32.mxu0 %vm3263_vm7, %v3261_v52 }
 0x85a   :  { %2801 = vmatpush3.msra.mxu1 %v2549_v32  ;;  %2814 = vmatpush3.msra.mxu0 %v2048_v5 }
 0x85b   :  { %2802 = vmatprep.subr.mxu1 %v3261_v52  ;;  %2818 = vmatprep.subr.bf16.mxu0 %v3261_v52 }
 0x85c   :  { %2803 = vmatpush3.msra.mxu1 %v2546_v34 }
 0x85d   :  { %2804 = vmatprep.subr.mxu1 %v3261_v52 }
 0x85e   :  { %2805 = vmatpush3.msra.mxu1 %v2545_v35 }
 0x85f   :  { %2806 = vmatprep.subr.mxu1 %v3261_v52 }
 0x860   :  { %2807 = vmatpush3.msra.mxu1 %v2542_v37 }
 0x861   :  { %2808 = vmatprep.subr.mxu1 %v3261_v52 }
 0x862   :  { %2809 = vmatpush3.msra.mxu1 %v2541_v39 }
 0x918   :  { %v2744_v40 = vpop.f32.mrf.mxu0 }
 0x91a   :  { %v2745_v42 = vpop.f32.mrf.mxu0 }
 0x91b   :  { %v3917_v43 = vadd.f32 %v2745_v42, %v2744_v40 }
 0x91c   :  { %v2747_v44 = vpop.f32.mrf.mxu0 }
 0x91d   :  { %v1885_v46 = vsel %vm279_vm2, %v3917_v43, 0.0  ;;  %v1892_v47 = vmul.f32 %v3917_v43, %v3917_v43 }
 0x91e   :  { %v1886_v48 = vrot.slane %v1885_v46, 4  ;;  %v2748_v49 = vpop.f32.mrf.mxu0 }
 0x91f   :  { %v1893_v50 = vsel %vm279_vm2, %v1892_v47, 0.0 }
 0x920   :  { %v1887_v51 = vadd.f32 %v1886_v48, %v1885_v46  ;;  %v1894_v53 = vrot.slane %v1893_v50, 4 }
 0x922   :  { %v1888_v56 = vrot.slane %v1887_v51, 2  ;;  %v1895_v57 = vadd.f32 %v1894_v53, %v1893_v50 }
 0x924   :  { %v1889_v59 = vadd.f32 %v1888_v56, %v1887_v51  ;;  %v1896_v61 = vrot.slane %v1895_v57, 2 }
 0x926   :  { %v1890_v62 = vrot.slane %v1889_v59, 1  ;;  %v1897_v63 = vadd.f32 %v1896_v61, %v1895_v57 }
 0x928   :  { %v1898_v0 = vrot.slane %v1897_v63, 1  ;;  %v1891_v1 = vadd.f32 %v1890_v62, %v1889_v59 }
 0x92a   :  { %v1899_v2 = vadd.f32 %v1898_v0, %v1897_v63 }
 0x92c   :  { %v1900_v3 = vsel %vm219_vm3, %v1899_v2, %v1891_v1 }
 0x92d   :  { %2811 = vmatmul.mubr.f32.vlgmr.msra.gmra.mxu1 %v1900_v3 }
 0x9ed   :  { %v1999_v6 = vpop.f32.mrf.mxu1 }
 0x9ee   :  { %v2003_v8 = vmul.f32 0.03125, %v1999_v6 }
 0x9ef   :  { %v2812_v9 = vpop.f32.mrf.mxu1 }
 0x9f0   :  { %v2004_v10 = vmul.f32 %v2003_v8, %v2003_v8 }
 0x9f2   :  { %v2006_v11 = vrot.slane %v2004_v10, 7 }
 0x9f4   :  { %v2008_v55 = vsub.f32 %v2003_v8, %v2006_v11 }
 0x9f6   :  { %v2009_v12 = vmax.f32 %v2008_v55, 0.0 }
 0x9f8   :  { %v2011_v13 = vadd.f32 1e-05, %v2009_v12 }
 0x9fa   :  { %2986 = vrsqrt.f32 %v2011_v13 }
 0xa07   :  { %v2987_v14 = vpop.eup %2986 }
 0xa08   :  { %v2020_v60 = vrot.slane %v2987_v14, %v3574_v30 }
 0xa0a   :  { %v2021_v15 = vcombine.high %v2020_v60, %v2020_v60 }
 0xa0c   :  { %v2028_v18 = vrot.slane %v2021_v15, %v3574_v30  ;;  %v2973_v30 = vld [vmem:[%s3997_s21 + $0x30] sm:$0xff]  }
 0xa0e   :  { %v2030_v19 = vmul.f32 %v2028_v18, %v2010_v17 }
 0xa10   :  { %v2032_v21 = vmul.f32 %v2030_v19, %v2003_v8  ;;  %v2044_v23 = vrot.slane %v2030_v19, %v3579_v38 }
 0xa12   :  { %v2033_v22 = vsub.f32 %v2031_v20, %v2032_v21 }
 0xa14   :  { %v2038_v54 = vrot.slane %v2033_v22, %v3579_v38 }
 0xa16   :  { %v2046_v25 = vsel %vm219_vm3, %v2038_v54, %v2044_v23 }
 0xa17   :  { %2816 = vmatmul.mubr.msk.f32.vlgmr.msra.gmra.mxu0 %vm227_vm1, %v2046_v25 }
 0xa18   :  { %2819 = vmatpush3.bf16.msra.mxu0 %v2972_v24  ;;  %2834 = vmatprep.mubr.msk.bf16.mxu0 %vm3263_vm7, %v3261_v52 }
 0xa19   :  { %2820 = vmatprep.subr.bf16.mxu0 %v3261_v52 }
 0xa1c   :  { %2821 = vmatpush3.bf16.msra.mxu0 %v2973_v30 }
 0xa1d   :  { %2822 = vmatprep.subr.bf16.mxu0 %v3261_v52 }
 0xa20   :  { %2823 = vmatpush3.bf16.msra.mxu0 %v2974_v41 }
 0xa21   :  { %2824 = vmatprep.subr.bf16.mxu0 %v3261_v52 }
 0xa24   :  { %2825 = vmatpush3.bf16.msra.mxu0 %v2975_v16 }
 0xa25   :  { %2826 = vmatprep.subr.bf16.mxu0 %v3261_v52 }
 0xa28   :  { %2827 = vmatpush3.bf16.msra.mxu0 %v2976_v58 }
 0xa29   :  { %2828 = vmatprep.subr.bf16.mxu0 %v3261_v52 }
 0xa2c   :  { %2829 = vmatpush3.bf16.msra.mxu0 %v2977_v45 }
 0xa2d   :  { %2830 = vmatprep.subr.bf16.mxu0 %v3261_v52 }
 0xa30   :  { %2831 = vmatpush3.bf16.msra.mxu0 %v2978_v26 }
 0xa31   :  { %2832 = vmatprep.subr.bf16.mxu0 %v3261_v52 }
 0xa34   :  { %2833 = vmatpush3.bf16.msra.mxu0 %v2979_v27 }
 0xad7   :  { %v2118_v28 = vpop.f32.mrf.mxu0 }
 0xad8   :  { %v2125_v29 = vrot.slane %v2118_v28, %v3579_v38  ;;  %v2130_v33 = vrot.slane %v2118_v28, %v3622_v7 }
 0xad9   :  { %v2817_v31 = vpop.f32.mrf.mxu0 }
 0xada   :  { %v2126_v32 = vmul.f32 %v3917_v43, %v2125_v29 }
 0xadc   :  { %v2131_v34 = vadd.f32 %v2130_v33, %v2126_v32 }
 0xade   :  { %v2132_v35 = vmax.f32 %v2131_v34, 0.0 }
 0xae0   :  { %v2133_v36 = vpack.c.bf16 %v2132_v35, %v2132_v35 }
 0xae2   :  { %2835 = vmatmul.mubr.bf16.vlgmr.msra.gmra.mxu0 %v2133_v36 }
 0xba2   :  { %v2232_v37 = vpop.f32.mrf.mxu0 }
 0xba3   :  { %2988 = vtanh.f32 %v2232_v37 }
 0xba4   :  { %v2836_v52 = vpop.f32.mrf.mxu0 }
 0xba6   :  { %v2235_v39 = vpop.f32.mrf.mxu0 }
 0xba8   :  { %v2837_v40 = vpop.f32.mrf.mxu0 }
 0xbb0   :  { %v2989_v42 = vpop.eup %2988 }
 0xbb1   :  { %2239 = vst [vmem:[%s3998_s22] sm:$0x3] %v2989_v42 }
 0xbb2   :  { %2244 = vsyncpa [#allocation3], 1 }
 0xbb3   :  { %2245 = vsyncpa [#allocation5], 1 }
 0xbb4   :  { %2246 = vsyncpa [#allocation8], 1 }
 0xbb5   :  { %2247 = vsyncpa [#allocation11], 1 }
 0xbb6   :  { %2248 = vsyncpa [#allocation14], 1 }
 0xbb7   :  { %2249 = vsyncpa [#allocation17], 1 }
 0xbb8   :  { %2250 = vsyncpa [#allocation20], 1 }

</bundles_post_ra>
